<compile_context>
chip_gen: v5e
topology: v5e:2x2
jax: 0.10.0
libtpu: 0.0.40
codegen_flags: <defaults>
</compile_context>

<pallas_src>
import functools

import jax
import jax.numpy as jnp
from jax.experimental import pallas as pl
from jax.experimental.pallas import tpu as pltpu


F_PAD = 128  # every feature dim is zero-padded to one lane-width (128) for lane-dense stores


def _vmem_limit_bytes():
    """Generation-dependent scoped-VMEM limit: ~3/4 of physical, capped at 100 MiB."""
    limit = 48 << 20  # safe default (fits v7x's 64 MiB physical VMEM)
    try:
        info = pltpu.get_tpu_info()
        cap = getattr(info, "vmem_capacity_bytes", None)
        if cap:
            limit = int(min(100 << 20, (int(cap) * 3) // 4))
    except Exception:
        pass
    return int(limit)


# ---------------------------------------------------------------------------
# Fused kernel: degree normalization + all SAGEConv layers in one grid step.
# ---------------------------------------------------------------------------
def _fused_sage_kernel(adj_ref, x0_ref, wl_ref, wr_ref, b_ref, o_ref, *, num_layers):
    adj = adj_ref[...]                                                # bf16 [N, N], exact 0/1

    # Degree / inverse degree, computed once per call (exact: 0/1 values, f32 reduction).
    deg = jnp.sum(adj.astype(jnp.float32), axis=-1, keepdims=True)    # [N, 1]
    inv_deg = jnp.where(deg > 0.0, 1.0 / jnp.maximum(deg, 1.0), 0.0)  # [N, 1] f32

    x = x0_ref[...]                                                   # f32 [N, F_PAD]
    out = x
    for layer in range(num_layers):                                   # static -> fully unrolled
        xb = x.astype(jnp.bfloat16)
        # Mean aggregation: bf16 MXU matmul, f32 accumulation, f32 post-scale by 1/deg.
        agg = jnp.dot(adj, xb, preferred_element_type=jnp.float32) * inv_deg      # [N, F_PAD]
        # lin_l(agg) + lin_r(x) + b_l  as two accumulated bf16 dots (no concat temp).
        out = (jnp.dot(agg.astype(jnp.bfloat16), wl_ref[layer],
                       preferred_element_type=jnp.float32)
               + jnp.dot(xb, wr_ref[layer], preferred_element_type=jnp.float32)
               + b_ref[layer])                                                    # [N, F_PAD] f32
        if layer < num_layers - 1:
            x = jnp.maximum(out, 0.0)          # relu; dropout = identity at inference

    o_ref[...] = out.astype(o_ref.dtype)        # single lane-dense store of the last layer


def fused_sage(adj_bf16, x_pad, wl_all, wr_all, b_all):
    n = adj_bf16.shape[0]
    num_layers, f_pad, _ = wl_all.shape

    # Resident fast path: whole adjacency + features + weights must fit in VMEM.
    resident_bytes = 2 * (2 * n * n) + 4 * (2 * (n * f_pad) * 2) \
        + 2 * (2 * 2 * num_layers * f_pad * f_pad)
    assert resident_bytes < _vmem_limit_bytes(), (
        "graph too large for the VMEM-resident path; see TODO(synk) row-tiled variant")

    kernel = functools.partial(_fused_sage_kernel, num_layers=num_layers)
    return pl.pallas_call(
        kernel,
        out_shape=jax.ShapeDtypeStruct((n, f_pad), jnp.float32),
        grid=(1,),
        in_specs=[
            pl.BlockSpec((n, n), lambda l: (0, 0)),                         # adjacency (bf16 0/1)
            pl.BlockSpec((n, f_pad), lambda l: (0, 0)),                     # padded input features
            pl.BlockSpec((num_layers, f_pad, f_pad), lambda l: (0, 0, 0)),  # W_l (all layers)
            pl.BlockSpec((num_layers, f_pad, f_pad), lambda l: (0, 0, 0)),  # W_r (all layers)
            pl.BlockSpec((num_layers, 1, f_pad), lambda l: (0, 0, 0)),      # b_l (all layers)
        ],
        out_specs=pl.BlockSpec((n, f_pad), lambda l: (0, 0)),
        compiler_params=pltpu.CompilerParams(
            dimension_semantics=("arbitrary",),
            vmem_limit_bytes=_vmem_limit_bytes(),
        ),
    )(adj_bf16, x_pad, wl_all, wr_all, b_all)


# ---------------------------------------------------------------------------
# Parameter handling.
# ---------------------------------------------------------------------------
def init_params(key, in_channels, hidden_channels, out_channels, num_layers):
    """Deterministic Glorot-ish init for the SAGEConv stack."""
    dims = [in_channels] + [hidden_channels] * (num_layers - 1) + [out_channels]
    params = []
    for layer in range(num_layers):
        f_in, f_out = dims[layer], dims[layer + 1]
        key, k1, k2, k3 = jax.random.split(key, 4)
        scale = (6.0 / (f_in + f_out)) ** 0.5
        w_l = jax.random.uniform(k1, (f_in, f_out), jnp.float32, -scale, scale)
        w_r = jax.random.uniform(k2, (f_in, f_out), jnp.float32, -scale, scale)
        b_l = jax.random.uniform(k3, (1, f_out), jnp.float32, -0.1, 0.1)
        params.append((w_l, w_r, b_l))
    return params


def _pad2(a, rows, cols):
    return jnp.pad(a, ((0, rows - a.shape[0]), (0, cols - a.shape[1])))


def pack_params(params, f_pad=F_PAD):
    """Zero-pad each layer to [f_pad, f_pad] (bf16 weights) and [1, f_pad] (f32 bias)."""
    wl_all, wr_all, b_all = [], [], []
    for (w_l, w_r, b_l) in params:
        wl_all.append(_pad2(w_l, f_pad, f_pad).astype(jnp.bfloat16))
        wr_all.append(_pad2(w_r, f_pad, f_pad).astype(jnp.bfloat16))
        b_all.append(_pad2(b_l, 1, f_pad))
    return jnp.stack(wl_all), jnp.stack(wr_all), jnp.stack(b_all)


@functools.partial(jax.jit, static_argnames=("out_channels",))
def sage_link_pred_forward(x, adj_t, wl_all, wr_all, b_all, *, out_channels):
    """Forward pass of SAGE_LINK_PRED (eval mode: dropout = identity)."""
    n = x.shape[0]
    f_pad = wl_all.shape[-1]
    assert x.shape[1] <= f_pad
    n_pad = ((n + 127) // 128) * 128  # lane/sublane-aligned node count (padded nodes isolated)

    # One-time preprocessing: pad + cast the exact 0/1 adjacency to bf16 (lossless).
    adj_bf = jnp.pad(adj_t, ((0, n_pad - n), (0, n_pad - n))).astype(jnp.bfloat16)
    x_pad = jnp.pad(x, ((0, n_pad - n), (0, f_pad - x.shape[1])))

    out_pad = fused_sage(adj_bf, x_pad, wl_all, wr_all, b_all)  # single fused kernel
    return out_pad[:n, :out_channels]


# ---------------------------------------------------------------------------
# Pure-JAX f32 reference (spec semantics).
# ---------------------------------------------------------------------------
def reference_forward(x, adj_t, params):
    deg = jnp.sum(adj_t, axis=-1, keepdims=True)
    inv_deg = jnp.where(deg > 0.0, 1.0 / jnp.maximum(deg, 1.0), 0.0)

    def conv(x, w_l, w_r, b_l):
        agg = (adj_t @ x) * inv_deg
        return agg @ w_l + x @ w_r + b_l

    for (w_l, w_r, b_l) in params[:-1]:
        x = jnp.maximum(conv(x, w_l, w_r, b_l), 0.0)
    w_l, w_r, b_l = params[-1]
    return conv(x, w_l, w_r, b_l)


if __name__ == "__main__":
    # Small, module-consistent shapes.
    num_nodes = 128
    in_channels = 16
    hidden_channels = 32
    out_channels = 8
    num_layers = 3
    dropout = 0.5  # inference: identity

    key = jax.random.PRNGKey(0)
    k_x, k_adj, k_params = jax.random.split(key, 3)

    x = jax.random.normal(k_x, (num_nodes, in_channels), jnp.float32)
    # Sparse-ish random directed adjacency (dense 0/1 float representation of adj_t).
    adj_t = (jax.random.uniform(k_adj, (num_nodes, num_nodes)) < 0.05).astype(jnp.float32)

    params = init_params(k_params, in_channels, hidden_channels, out_channels, num_layers)
    wl_all, wr_all, b_all = pack_params(params)

    out = sage_link_pred_forward(x, adj_t, wl_all, wr_all, b_all, out_channels=out_channels)
    out = jax.block_until_ready(out)

    ref = reference_forward(x, adj_t, params)
    assert out.shape == (num_nodes, out_channels), out.shape

    # bf16 MXU matmuls (f32 accumulation) vs. the f32 reference: allow ~ few % error.
    err = float(jnp.max(jnp.abs(out - ref)))
    scale = float(jnp.max(jnp.abs(ref)))
    assert err <= 5e-2 * scale + 5e-2, f"mismatch vs reference: max|err|={err}, max|ref|={scale}"

    print("KERNEL_OK")
</pallas_src>

<mosaic_0001>
module attributes {stable_mosaic.version = 11 : i64} {
  func.func @_fused_sage_kernel(%arg0: i32, %arg1: memref<128x128xbf16, #tpu.memory_space<vmem>>, %arg2: memref<128x128xf32, #tpu.memory_space<vmem>>, %arg3: memref<3x128x128xbf16, #tpu.memory_space<vmem>>, %arg4: memref<3x128x128xbf16, #tpu.memory_space<vmem>>, %arg5: memref<3x1x128xf32, #tpu.memory_space<vmem>>, %arg6: memref<128x128xf32, #tpu.memory_space<vmem>>) attributes {dimension_semantics = [#tpu.dimension_semantics<arbitrary>], iteration_bounds = array<i64: 1>, scalar_prefetch = 0 : i64, scratch_operands = 0 : i64, tpu.core_type = #tpu.core_type<tc>, window_params = [{pipeline_mode = #tpu.pipeline_mode<synchronous>, transform_indices = @transform_0, window_bounds = array<i64: 128, 128>}, {pipeline_mode = #tpu.pipeline_mode<synchronous>, transform_indices = @transform_1, window_bounds = array<i64: 128, 128>}, {pipeline_mode = #tpu.pipeline_mode<synchronous>, transform_indices = @transform_2, window_bounds = array<i64: 3, 128, 128>}, {pipeline_mode = #tpu.pipeline_mode<synchronous>, transform_indices = @transform_3, window_bounds = array<i64: 3, 128, 128>}, {pipeline_mode = #tpu.pipeline_mode<synchronous>, transform_indices = @transform_4, window_bounds = array<i64: 3, 1, 128>}, {pipeline_mode = #tpu.pipeline_mode<synchronous>, transform_indices = @transform_5, window_bounds = array<i64: 128, 128>}]} {
    %c0 = arith.constant 0 : index
    %c0_0 = arith.constant 0 : index
    %0 = vector.load %arg1[%c0, %c0_0] : memref<128x128xbf16, #tpu.memory_space<vmem>>, vector<128x128xbf16>
    %1 = arith.extf %0 : vector<128x128xbf16> to vector<128x128xf32>
    %cst = arith.constant dense<0.000000e+00> : vector<128xf32>
    %2 = vector.multi_reduction <add>, %1, %cst [1] : vector<128x128xf32> to vector<128xf32>
    %3 = vector.shape_cast %2 : vector<128xf32> to vector<128x1xf32>
    %cst_1 = arith.constant 0.000000e+00 : f32
    %4 = vector.broadcast %cst_1 : f32 to vector<128x1xf32>
    %5 = arith.cmpf ogt, %3, %4 : vector<128x1xf32>
    %cst_2 = arith.constant 1.000000e+00 : f32
    %6 = vector.broadcast %cst_2 : f32 to vector<128x1xf32>
    %7 = arith.maximumf %3, %6 : vector<128x1xf32>
    %cst_3 = arith.constant 1.000000e+00 : f32
    %8 = vector.broadcast %cst_3 : f32 to vector<128x1xf32>
    %9 = arith.divf %8, %7 : vector<128x1xf32>
    %cst_4 = arith.constant 0.000000e+00 : f32
    %10 = vector.broadcast %cst_4 : f32 to vector<128x1xf32>
    %11 = arith.select %5, %9, %10 : vector<128x1xi1>, vector<128x1xf32>
    %c0_5 = arith.constant 0 : index
    %c0_6 = arith.constant 0 : index
    %12 = vector.load %arg2[%c0_5, %c0_6] : memref<128x128xf32, #tpu.memory_space<vmem>>, vector<128x128xf32>
    %13 = arith.truncf %12 : vector<128x128xf32> to vector<128x128xbf16>
    %cst_7 = arith.constant dense<0.000000e+00> : vector<128x128xf32>
    %14 = tpu.matmul %0, %13, %cst_7 {dimension_numbers = #tpu.dot_dimension_numbers<[1], [0], [0], [1], [0, 0, 1, 1], [], []>} : vector<128x128xbf16>, vector<128x128xbf16>, vector<128x128xf32> -> vector<128x128xf32>
    %15 = vector.broadcast %11 : vector<128x1xf32> to vector<128x128xf32>
    %16 = arith.mulf %14, %15 : vector<128x128xf32>
    %17 = arith.truncf %16 : vector<128x128xf32> to vector<128x128xbf16>
    %c0_8 = arith.constant 0 : index
    %c0_9 = arith.constant 0 : index
    %c0_10 = arith.constant 0 : index
    %18 = vector.load %arg3[%c0_8, %c0_9, %c0_10] : memref<3x128x128xbf16, #tpu.memory_space<vmem>>, vector<1x128x128xbf16>
    %19 = vector.shape_cast %18 : vector<1x128x128xbf16> to vector<128x128xbf16>
    %cst_11 = arith.constant dense<0.000000e+00> : vector<128x128xf32>
    %20 = tpu.matmul %17, %19, %cst_11 {dimension_numbers = #tpu.dot_dimension_numbers<[1], [0], [0], [1], [0, 0, 1, 1], [], []>} : vector<128x128xbf16>, vector<128x128xbf16>, vector<128x128xf32> -> vector<128x128xf32>
    %c0_12 = arith.constant 0 : index
    %c0_13 = arith.constant 0 : index
    %c0_14 = arith.constant 0 : index
    %21 = vector.load %arg4[%c0_12, %c0_13, %c0_14] : memref<3x128x128xbf16, #tpu.memory_space<vmem>>, vector<1x128x128xbf16>
    %22 = vector.shape_cast %21 : vector<1x128x128xbf16> to vector<128x128xbf16>
    %cst_15 = arith.constant dense<0.000000e+00> : vector<128x128xf32>
    %23 = tpu.matmul %13, %22, %cst_15 {dimension_numbers = #tpu.dot_dimension_numbers<[1], [0], [0], [1], [0, 0, 1, 1], [], []>} : vector<128x128xbf16>, vector<128x128xbf16>, vector<128x128xf32> -> vector<128x128xf32>
    %24 = arith.addf %20, %23 : vector<128x128xf32>
    %c0_16 = arith.constant 0 : index
    %c0_17 = arith.constant 0 : index
    %c0_18 = arith.constant 0 : index
    %25 = vector.load %arg5[%c0_16, %c0_17, %c0_18] : memref<3x1x128xf32, #tpu.memory_space<vmem>>, vector<1x1x128xf32>
    %26 = vector.shape_cast %25 : vector<1x1x128xf32> to vector<1x128xf32>
    %27 = vector.broadcast %26 : vector<1x128xf32> to vector<128x128xf32>
    %28 = arith.addf %24, %27 : vector<128x128xf32>
    %cst_19 = arith.constant 0.000000e+00 : f32
    %29 = vector.broadcast %cst_19 : f32 to vector<128x128xf32>
    %30 = arith.maximumf %28, %29 : vector<128x128xf32>
    %31 = arith.truncf %30 : vector<128x128xf32> to vector<128x128xbf16>
    %cst_20 = arith.constant dense<0.000000e+00> : vector<128x128xf32>
    %32 = tpu.matmul %0, %31, %cst_20 {dimension_numbers = #tpu.dot_dimension_numbers<[1], [0], [0], [1], [0, 0, 1, 1], [], []>} : vector<128x128xbf16>, vector<128x128xbf16>, vector<128x128xf32> -> vector<128x128xf32>
    %33 = vector.broadcast %11 : vector<128x1xf32> to vector<128x128xf32>
    %34 = arith.mulf %32, %33 : vector<128x128xf32>
    %35 = arith.truncf %34 : vector<128x128xf32> to vector<128x128xbf16>
    %c1 = arith.constant 1 : index
    %c0_21 = arith.constant 0 : index
    %c0_22 = arith.constant 0 : index
    %36 = vector.load %arg3[%c1, %c0_21, %c0_22] : memref<3x128x128xbf16, #tpu.memory_space<vmem>>, vector<1x128x128xbf16>
    %37 = vector.shape_cast %36 : vector<1x128x128xbf16> to vector<128x128xbf16>
    %cst_23 = arith.constant dense<0.000000e+00> : vector<128x128xf32>
    %38 = tpu.matmul %35, %37, %cst_23 {dimension_numbers = #tpu.dot_dimension_numbers<[1], [0], [0], [1], [0, 0, 1, 1], [], []>} : vector<128x128xbf16>, vector<128x128xbf16>, vector<128x128xf32> -> vector<128x128xf32>
    %c1_24 = arith.constant 1 : index
    %c0_25 = arith.constant 0 : index
    %c0_26 = arith.constant 0 : index
    %39 = vector.load %arg4[%c1_24, %c0_25, %c0_26] : memref<3x128x128xbf16, #tpu.memory_space<vmem>>, vector<1x128x128xbf16>
    %40 = vector.shape_cast %39 : vector<1x128x128xbf16> to vector<128x128xbf16>
    %cst_27 = arith.constant dense<0.000000e+00> : vector<128x128xf32>
    %41 = tpu.matmul %31, %40, %cst_27 {dimension_numbers = #tpu.dot_dimension_numbers<[1], [0], [0], [1], [0, 0, 1, 1], [], []>} : vector<128x128xbf16>, vector<128x128xbf16>, vector<128x128xf32> -> vector<128x128xf32>
    %42 = arith.addf %38, %41 : vector<128x128xf32>
    %c1_28 = arith.constant 1 : index
    %c0_29 = arith.constant 0 : index
    %c0_30 = arith.constant 0 : index
    %43 = vector.load %arg5[%c1_28, %c0_29, %c0_30] : memref<3x1x128xf32, #tpu.memory_space<vmem>>, vector<1x1x128xf32>
    %44 = vector.shape_cast %43 : vector<1x1x128xf32> to vector<1x128xf32>
    %45 = vector.broadcast %44 : vector<1x128xf32> to vector<128x128xf32>
    %46 = arith.addf %42, %45 : vector<128x128xf32>
    %cst_31 = arith.constant 0.000000e+00 : f32
    %47 = vector.broadcast %cst_31 : f32 to vector<128x128xf32>
    %48 = arith.maximumf %46, %47 : vector<128x128xf32>
    %49 = arith.truncf %48 : vector<128x128xf32> to vector<128x128xbf16>
    %cst_32 = arith.constant dense<0.000000e+00> : vector<128x128xf32>
    %50 = tpu.matmul %0, %49, %cst_32 {dimension_numbers = #tpu.dot_dimension_numbers<[1], [0], [0], [1], [0, 0, 1, 1], [], []>} : vector<128x128xbf16>, vector<128x128xbf16>, vector<128x128xf32> -> vector<128x128xf32>
    %51 = vector.broadcast %11 : vector<128x1xf32> to vector<128x128xf32>
    %52 = arith.mulf %50, %51 : vector<128x128xf32>
    %53 = arith.truncf %52 : vector<128x128xf32> to vector<128x128xbf16>
    %c2 = arith.constant 2 : index
    %c0_33 = arith.constant 0 : index
    %c0_34 = arith.constant 0 : index
    %54 = vector.load %arg3[%c2, %c0_33, %c0_34] : memref<3x128x128xbf16, #tpu.memory_space<vmem>>, vector<1x128x128xbf16>
    %55 = vector.shape_cast %54 : vector<1x128x128xbf16> to vector<128x128xbf16>
    %cst_35 = arith.constant dense<0.000000e+00> : vector<128x128xf32>
    %56 = tpu.matmul %53, %55, %cst_35 {dimension_numbers = #tpu.dot_dimension_numbers<[1], [0], [0], [1], [0, 0, 1, 1], [], []>} : vector<128x128xbf16>, vector<128x128xbf16>, vector<128x128xf32> -> vector<128x128xf32>
    %c2_36 = arith.constant 2 : index
    %c0_37 = arith.constant 0 : index
    %c0_38 = arith.constant 0 : index
    %57 = vector.load %arg4[%c2_36, %c0_37, %c0_38] : memref<3x128x128xbf16, #tpu.memory_space<vmem>>, vector<1x128x128xbf16>
    %58 = vector.shape_cast %57 : vector<1x128x128xbf16> to vector<128x128xbf16>
    %cst_39 = arith.constant dense<0.000000e+00> : vector<128x128xf32>
    %59 = tpu.matmul %49, %58, %cst_39 {dimension_numbers = #tpu.dot_dimension_numbers<[1], [0], [0], [1], [0, 0, 1, 1], [], []>} : vector<128x128xbf16>, vector<128x128xbf16>, vector<128x128xf32> -> vector<128x128xf32>
    %60 = arith.addf %56, %59 : vector<128x128xf32>
    %c2_40 = arith.constant 2 : index
    %c0_41 = arith.constant 0 : index
    %c0_42 = arith.constant 0 : index
    %61 = vector.load %arg5[%c2_40, %c0_41, %c0_42] : memref<3x1x128xf32, #tpu.memory_space<vmem>>, vector<1x1x128xf32>
    %62 = vector.shape_cast %61 : vector<1x1x128xf32> to vector<1x128xf32>
    %63 = vector.broadcast %62 : vector<1x128xf32> to vector<128x128xf32>
    %64 = arith.addf %60, %63 : vector<128x128xf32>
    %c0_43 = arith.constant 0 : index
    %c0_44 = arith.constant 0 : index
    %65 = vector.load %arg6[%c0_43, %c0_44] : memref<128x128xf32, #tpu.memory_space<vmem>>, vector<128x128xf32>
    tpu.vector_store %arg6[%c0_43, %c0_44], %64 {strides = array<i32>} : memref<128x128xf32, #tpu.memory_space<vmem>>, vector<128x128xf32>,
    return
  }
  func.func @transform_0(%arg0: i32) -> (i32, i32) {
    %c0_i32 = arith.constant 0 : i32
    %c0_i32_0 = arith.constant 0 : i32
    %c0_i32_1 = arith.constant 0 : i32
    return %c0_i32, %c0_i32_0 : i32, i32
  }
  func.func @transform_1(%arg0: i32) -> (i32, i32) {
    %c0_i32 = arith.constant 0 : i32
    %c0_i32_0 = arith.constant 0 : i32
    %c0_i32_1 = arith.constant 0 : i32
    return %c0_i32, %c0_i32_0 : i32, i32
  }
  func.func @transform_2(%arg0: i32) -> (i32, i32, i32) {
    %c0_i32 = arith.constant 0 : i32
    %c0_i32_0 = arith.constant 0 : i32
    %c0_i32_1 = arith.constant 0 : i32
    %c0_i32_2 = arith.constant 0 : i32
    return %c0_i32, %c0_i32_0, %c0_i32_1 : i32, i32, i32
  }
  func.func @transform_3(%arg0: i32) -> (i32, i32, i32) {
    %c0_i32 = arith.constant 0 : i32
    %c0_i32_0 = arith.constant 0 : i32
    %c0_i32_1 = arith.constant 0 : i32
    %c0_i32_2 = arith.constant 0 : i32
    return %c0_i32, %c0_i32_0, %c0_i32_1 : i32, i32, i32
  }
  func.func @transform_4(%arg0: i32) -> (i32, i32, i32) {
    %c0_i32 = arith.constant 0 : i32
    %c0_i32_0 = arith.constant 0 : i32
    %c0_i32_1 = arith.constant 0 : i32
    %c0_i32_2 = arith.constant 0 : i32
    return %c0_i32, %c0_i32_0, %c0_i32_1 : i32, i32, i32
  }
  func.func @transform_5(%arg0: i32) -> (i32, i32) {
    %c0_i32 = arith.constant 0 : i32
    %c0_i32_0 = arith.constant 0 : i32
    %c0_i32_1 = arith.constant 0 : i32
    return %c0_i32, %c0_i32_0 : i32, i32
  }
}

</mosaic_0001>

<bundles_post_ra>
// kernel: sage_link_pred_forward.1
= control target key start
LH: loop header
LB: loop body
LE: loop exit
PB: predicated region body
PF: predicated region fallthrough
CT: control target
= control target key end

     0   :  { %s2839_s1 = inlined_call_operand.vmem [shape: f32[128,128], index: 1, kind: input, shape index: {}]   ;;  %s2840_s0 = inlined_call_operand.vmem [shape: bf16[128,128], index: 0, kind: input, shape index: {}]   ;;  %s2841_s3 = inlined_call_operand.vmem [shape: bf16[3,128,128], index: 3, kind: input, shape index: {}]   ;;  %s2842_s2 = inlined_call_operand.vmem [shape: bf16[3,128,128], index: 2, kind: input, shape index: {}]   ;;  %s2843_s4 = inlined_call_operand.vmem [shape: f32[3,1,128], index: 4, kind: input, shape index: {}]   ;;  %s2844_s5 = inlined_call_operand.vmem [shape: f32[128,128], index: 5, kind: output, shape index: {}]  }
   0x1   :  { %v386_v0 = vld [vmem:[%s2839_s1 + $0x70] sm:$0xff]  ;;  %v387_v1 = vld [vmem:[%s2839_s1 + $0x78] sm:$0xff]  ;;  %v20_v2 = vld [vmem:[%s2840_s0] sm:$0xff]  }
   0x2   :  { %v1927_v3 = vpack.c.bf16 %v387_v1, %v386_v0  ;;  %v36_v4 = vunpack.c.l.bf16 %v20_v2  ;;  %v384_v5 = vld [vmem:[%s2839_s1 + $0x60] sm:$0xff]  ;;  %v385_v6 = vld [vmem:[%s2839_s1 + $0x68] sm:$0xff]  ;;  %v382_v9 = vld [vmem:[%s2839_s1 + $0x50] sm:$0xff]  ;;  %v37_v15 = vunpack.c.h.bf16 %v20_v2 }
   0x3   :  { %v1936_v7 = vpack.c.bf16 %v385_v6, %v384_v5  ;;  %v22_v8 = vld [vmem:[%s2840_s0 + $0x8] sm:$0xff]   ;;  %v383_v10 = vld [vmem:[%s2839_s1 + $0x58] sm:$0xff]  ;;  %v24_v12 = vld [vmem:[%s2840_s0 + $0x10] sm:$0xff]  }
   0x4   :  { %444 = vmatpush.bf16.msra.mxu0 %v1927_v3  ;;  %52 = vadd.xlane.f32.xlu0 %v36_v4  ;;  %v38_v11 = vunpack.c.l.bf16 %v22_v8  ;;  %v40_v13 = vunpack.c.l.bf16 %v24_v12  ;;  %v1954_v14 = vpack.c.bf16 %v383_v10, %v382_v9  ;;  %v380_v16 = vld [vmem:[%s2839_s1 + $0x40] sm:$0xff]  ;;  %v381_v17 = vld [vmem:[%s2839_s1 + $0x48] sm:$0xff]  ;;  %v39_v18 = vunpack.c.h.bf16 %v22_v8  ;;  %v378_v20 = vld [vmem:[%s2839_s1 + $0x30] sm:$0xff] }
   0x5   :  { %1821 = vmatpush.bf16.msra.mxu1 %v1927_v3  ;;  %1822 = vmatpush.bf16.msra.mxu2 %v1927_v3  ;;  %v1966_v19 = vpack.c.bf16 %v381_v17, %v380_v16  ;;  %v379_v21 = vld [vmem:[%s2839_s1 + $0x38] sm:$0xff]  ;;  %v41_v22 = vunpack.c.h.bf16 %v24_v12  ;;  %v376_v24 = vld [vmem:[%s2839_s1 + $0x20] sm:$0xff]  ;;  %v377_v25 = vld [vmem:[%s2839_s1 + $0x28] sm:$0xff] }
   0x6   :  { %1823 = vmatpush.bf16.msra.mxu3 %v1927_v3  ;;  %56 = vadd.xlane.f32.xlu1 %v38_v11  ;;  %v1978_v23 = vpack.c.bf16 %v379_v21, %v378_v20  ;;  %v27_v26 = vld [vmem:[%s2840_s0 + $0x1c] sm:$0xff]   ;;  %v26_v27 = vld [vmem:[%s2840_s0 + $0x18] sm:$0xf]  ;;  %v1996_v28 = vpack.c.bf16 %v377_v25, %v376_v24  ;;  %v374_v31 = vld [vmem:[%s2839_s1 + $0x10] sm:$0xff] }
   0x7   :  { %60 = vadd.xlane.f32.xlu2 %v40_v13  ;;  %v43_v29 = vunpack.c.l.bf16 %v27_v26  ;;  %v42_v30 = vunpack.c.l.bf16 %v26_v27  ;;  %v375_v32 = vld [vmem:[%s2839_s1 + $0x18] sm:$0xff]  ;;  %v44_v33 = vunpack.c.h.bf16 %v27_v26  ;;  %v29_v34 = vld [vmem:[%s2840_s0 + $0x24] sm:$0xff]   ;;  %v31_v39 = vld [vmem:[%s2840_s0 + $0x2c] sm:$0xff]  }
   0x8   :  { %445 = vmatpush.bf16.msra.mxu0 %v1936_v7  ;;  %v2011_v35 = vpack.c.bf16 %v375_v32, %v374_v31  ;;  %v372_v36 = vld [vmem:[%s2839_s1] sm:$0xff]  ;;  %v373_v37 = vld [vmem:[%s2839_s1 + $0x8] sm:$0xff]  ;;  %v45_v38 = vunpack.c.l.bf16 %v29_v34  ;;  %v46_v40 = vunpack.c.h.bf16 %v29_v34  ;;  %v47_v42 = vunpack.c.l.bf16 %v31_v39  ;;  %v1767_v44 = vld [vmem:[%s2840_s0 + $0x10] sm:$0xff] }
   0x9   :  { %1824 = vmatpush.bf16.msra.mxu1 %v1936_v7  ;;  %1825 = vmatpush.bf16.msra.mxu2 %v1936_v7  ;;  %v2026_v41 = vpack.c.bf16 %v373_v37, %v372_v36  ;;  %v1765_v43 = vld [vmem:[%s2840_s0] sm:$0xff]  ;;  %v33_v45 = vld [vmem:[%s2840_s0 + $0x34] sm:$0xff]   ;;  %v48_v48 = vunpack.c.h.bf16 %v31_v39  ;;  %v1766_v50 = vld [vmem:[%s2840_s0 + $0x8] sm:$0xff] }
   0xa   :  { %1826 = vmatpush.bf16.msra.mxu3 %v1936_v7  ;;  %v1769_v46 = vld [vmem:[%s2840_s0 + $0x20] sm:$0xff]  ;;  %v1771_v47 = vld [vmem:[%s2840_s0 + $0x30] sm:$0xff]  ;;  %v49_v49 = vunpack.c.l.bf16 %v33_v45  ;;  %v1768_v51 = vld [vmem:[%s2840_s0 + $0x18] sm:$0xff]  ;;  %v50_v55 = vunpack.c.h.bf16 %v33_v45 }
   0xb   :  { %v1770_v52 = vld [vmem:[%s2840_s0 + $0x28] sm:$0xff]  ;;  %v1772_v53 = vld [vmem:[%s2840_s0 + $0x38] sm:$0xff]  ;;  %v1787_v59 = vld [vmem:[%s2841_s3 + $0x30] sm:$0xff] }
   0xc   :  { %446 = vmatpush.bf16.msra.mxu0 %v1954_v14  ;;  %54 = vadd.xlane.f32.xlu0 %v37_v15  ;;  %v35_v54 = vld [vmem:[%s2840_s0 + $0x3c] sm:$0xf]  ;;  %v1779_v60 = vld [vmem:[%s2842_s2 + $0x30] sm:$0xff]  ;;  %v1786_v61 = vld [vmem:[%s2841_s3 + $0x28] sm:$0xff] }
   0xd   :  { %1827 = vmatpush.bf16.msra.mxu1 %v1954_v14  ;;  %1828 = vmatpush.bf16.msra.mxu2 %v1954_v14  ;;  %v51_v56 = vunpack.c.l.bf16 %v35_v54  ;;  %v1788_v57 = vld [vmem:[%s2841_s3 + $0x38] sm:$0xff]  ;;  %v1778_v62 = vld [vmem:[%s2842_s2 + $0x28] sm:$0xff]  ;;  %v1785_v63 = vld [vmem:[%s2841_s3 + $0x20] sm:$0xff] }
   0xe   :  { %1829 = vmatpush.bf16.msra.mxu3 %v1954_v14  ;;  %58 = vadd.xlane.f32.xlu1 %v39_v18  ;;  %v1780_v58 = vld [vmem:[%s2842_s2 + $0x38] sm:$0xff]  ;;  %v1777_v0 = vld [vmem:[%s2842_s2 + $0x20] sm:$0xff]  ;;  %v1783_v5 = vld [vmem:[%s2841_s3 + $0x10] sm:$0xff] }
   0xf   :  { %62 = vadd.xlane.f32.xlu2 %v41_v22  ;;  %v1784_v2 = vld [vmem:[%s2841_s3 + $0x18] sm:$0xff]  ;;  %v1775_v6 = vld [vmem:[%s2842_s2 + $0x10] sm:$0xff]  ;;  %v1782_v8 = vld [vmem:[%s2841_s3 + $0x8] sm:$0xff] }
  0x10   :  { %447 = vmatpush.bf16.msra.mxu0 %v1966_v19  ;;  %v1776_v4 = vld [vmem:[%s2842_s2 + $0x18] sm:$0xff]  ;;  %v1774_v10 = vld [vmem:[%s2842_s2 + $0x8] sm:$0xff]  ;;  %v1781_v13 = vld [vmem:[%s2841_s3] sm:$0xff] }
  0x11   :  { %1830 = vmatpush.bf16.msra.mxu1 %v1966_v19  ;;  %1831 = vmatpush.bf16.msra.mxu2 %v1966_v19  ;;  %v1773_v16 = vld [vmem:[%s2842_s2] sm:$0xff] }
  0x12   :  { %1832 = vmatpush.bf16.msra.mxu3 %v1966_v19 }
  0x14   :  { %448 = vmatpush.bf16.msra.mxu0 %v1978_v23  ;;  %64 = vadd.xlane.f32.xlu0 %v42_v30 }
  0x15   :  { %1833 = vmatpush.bf16.msra.mxu1 %v1978_v23  ;;  %1834 = vmatpush.bf16.msra.mxu2 %v1978_v23 }
  0x16   :  { %66 = vadd.xlane.f32.xlu1 %v43_v29  ;;  %1835 = vmatpush.bf16.msra.mxu3 %v1978_v23 }
  0x17   :  { %68 = vadd.xlane.f32.xlu2 %v44_v33 }
  0x18   :  { %449 = vmatpush.bf16.msra.mxu0 %v1996_v28 }
  0x19   :  { %1836 = vmatpush.bf16.msra.mxu1 %v1996_v28  ;;  %1837 = vmatpush.bf16.msra.mxu2 %v1996_v28 }
  0x1a   :  { %1838 = vmatpush.bf16.msra.mxu3 %v1996_v28 }
  0x1c   :  { %450 = vmatpush.bf16.msra.mxu0 %v2011_v35  ;;  %70 = vadd.xlane.f32.xlu0 %v45_v38 }
  0x1d   :  { %1839 = vmatpush.bf16.msra.mxu1 %v2011_v35  ;;  %1840 = vmatpush.bf16.msra.mxu2 %v2011_v35 }
  0x1e   :  { %72 = vadd.xlane.f32.xlu1 %v46_v40  ;;  %1841 = vmatpush.bf16.msra.mxu3 %v2011_v35 }
  0x1f   :  { %74 = vadd.xlane.f32.xlu2 %v47_v42 }
  0x20   :  { %451 = vmatpush.bf16.msra.mxu0 %v2026_v41 }
  0x21   :  { %1842 = vmatpush.bf16.msra.mxu1 %v2026_v41  ;;  %1843 = vmatpush.bf16.msra.mxu2 %v2026_v41 }
  0x22   :  { %1844 = vmatpush.bf16.msra.mxu3 %v2026_v41 }
  0x23   :  { %452 = vmatmul.bf16.vlgmr.msra.gmra.mxu0 %v1765_v43 }
  0x24   :  { %462 = vmatmul.bf16.vlgmr.msra.gmra.mxu1 %v1767_v44  ;;  %472 = vmatmul.bf16.vlgmr.msra.gmra.mxu2 %v1769_v46 }
  0x25   :  { %482 = vmatmul.bf16.vlgmr.msra.gmra.mxu3 %v1771_v47  ;;  %76 = vadd.xlane.f32.xlu0 %v48_v48 }
  0x26   :  { %78 = vadd.xlane.f32.xlu1 %v49_v49  ;;  %597 = vmatpush.bf16.msrb.mxu1 %v1788_v57 }
  0x27   :  { %80 = vadd.xlane.f32.xlu2 %v50_v55  ;;  %694 = vmatpush.bf16.msrb.mxu2 %v1780_v58 }
  0x2a   :  { %598 = vmatpush.bf16.msrb.mxu1 %v1787_v59 }
  0x2b   :  { %695 = vmatpush.bf16.msrb.mxu2 %v1779_v60 }
  0x2d   :  { %82 = vadd.xlane.f32.xlu0 %v51_v56 }
  0x2e   :  { %599 = vmatpush.bf16.msrb.mxu1 %v1786_v61 }
  0x2f   :  { %696 = vmatpush.bf16.msrb.mxu2 %v1778_v62 }
  0x32   :  { %600 = vmatpush.bf16.msrb.mxu1 %v1785_v63 }
  0x33   :  { %457 = vmatmul.bf16.gmra.mxu0 %v1766_v50  ;;  %697 = vmatpush.bf16.msrb.mxu2 %v1777_v0 }
  0x34   :  { %467 = vmatmul.bf16.gmra.mxu1 %v1768_v51  ;;  %477 = vmatmul.bf16.gmra.mxu2 %v1770_v52 }
  0x35   :  { %487 = vmatmul.bf16.gmra.mxu3 %v1772_v53 }
  0x36   :  { %601 = vmatpush.bf16.msrb.mxu1 %v1784_v2 }
  0x37   :  { %698 = vmatpush.bf16.msrb.mxu2 %v1776_v4 }
  0x3a   :  { %602 = vmatpush.bf16.msrb.mxu1 %v1783_v5 }
  0x3b   :  { %699 = vmatpush.bf16.msrb.mxu2 %v1775_v6 }
  0x3e   :  { %603 = vmatpush.bf16.msrb.mxu1 %v1782_v8 }
  0x3f   :  { %700 = vmatpush.bf16.msrb.mxu2 %v1774_v10 }
  0x42   :  { %604 = vmatpush.bf16.msrb.mxu1 %v1781_v13 }
  0x43   :  { %701 = vmatpush.bf16.msrb.mxu2 %v1773_v16 }
  0x45   :  { %605 = vmatmul.bf16.vlgmr.msrb.gmra.mxu1 %v2026_v41 }
  0x55   :  { %610 = vmatmul.bf16.gmra.mxu1 %v2011_v35 }
  0x65   :  { %615 = vmatmul.bf16.gmra.mxu1 %v1996_v28 }
  0x75   :  { %620 = vmatmul.bf16.gmra.mxu1 %v1978_v23 }
  0x77   :  { %v2089_v1 = vpop.xlane.xlu0 %52 }
  0x78   :  { %v100_v11 = vmax.f32 %v2089_v1, 1.0  ;;  %vm84_vm8 = vcmp.gt.f32.partialorder %v2089_v1, 0.0 }
  0x79   :  { %v2116_v15 = vpop.xlane.xlu1 %56 }
  0x7a   :  { %1848 = vrcp.f32 %v100_v11  ;;  %v2125_v24 = vmax.f32 %v2116_v15, 1.0  ;;  %v2127_v25 = vpop.xlane.xlu2 %60  ;;  %vm121_vm0 = vweird.f32 %v100_v11  ;;  %v125_v32 = vand.u32 2147483647, %v100_v11 }
  0x7b   :  { %v127_v36 = vand.u32 2147483648, %v100_v11  ;;  %v2150_v43 = vmax.f32 %v2127_v25, 1.0 }
  0x7c   :  { %vm126_vm6 = vcmp.eq.f32.partialorder %v125_v32, 8.507059e+37  ;;  %vm151_vm10 = vweird.f32 %v2125_v24  ;;  %v155_v2 = vand.u32 2147483647, %v2125_v24  ;;  %v157_v6 = vand.u32 2147483648, %v2125_v24 }
  0x7d   :  { %v128_v47 = vor.u32 1.1754944e-38, %v127_v36  ;;  %v185_v36 = vand.u32 2147483647, %v2150_v43 }
  0x7f   :  { %v2106_v9 = vpop.xlane.xlu0 %54 }
  0x80   :  { %v101_v12 = vmax.f32 %v2106_v9, 1.0  ;;  %v1849_v17 = vpop.eup %1848  ;;  %vm85_vm9 = vcmp.gt.f32.partialorder %v2106_v9, 0.0 }
  0x81   :  { %v117_v20 = vmul.f32 %v1849_v17, %v100_v11  ;;  %v2122_v22 = vpop.xlane.xlu1 %58  ;;  %vm122_vm1 = vweird.f32 %v1849_v17 }
  0x82   :  { %1850 = vrcp.f32 %v101_v12  ;;  %v2130_v26 = vmax.f32 %v2122_v22, 1.0  ;;  %vm136_vm2 = vweird.f32 %v101_v12  ;;  %v140_v33 = vand.u32 2147483647, %v101_v12  ;;  %v2137_v39 = vpop.xlane.xlu2 %62  ;;  %vm2139_vm4 = vmor %vm121_vm0, %vm122_vm1 }
  0x83   :  { %v118_v29 = vsub.f32 1.0, %v117_v20  ;;  %1852 = vrcp.f32 %v2125_v24  ;;  %v142_v34 = vand.u32 2147483648, %v101_v12  ;;  %v2153_v46 = vmax.f32 %v2137_v39, 1.0 }
  0x84   :  { %1854 = vrcp.f32 %v2130_v26  ;;  %vm141_vm7 = vcmp.eq.f32.partialorder %v140_v33, 8.507059e+37  ;;  %vm166_vm12 = vweird.f32 %v2130_v26  ;;  %v170_v4 = vand.u32 2147483647, %v2130_v26 }
  0x85   :  { %v119_v31 = vmul.f32 %v1849_v17, %v118_v29  ;;  %v143_v45 = vor.u32 1.1754944e-38, %v142_v34  ;;  %1856 = vrcp.f32 %v2150_v43  ;;  %v172_v5 = vand.u32 2147483648, %v2130_v26  ;;  %625 = vmatmul.bf16.gmra.mxu1 %v1966_v19 }
  0x86   :  { %1858 = vrcp.f32 %v2153_v46  ;;  %vm156_vm0 = vcmp.eq.f32.partialorder %v155_v2, 8.507059e+37  ;;  %vm171_vm1 = vcmp.eq.f32.partialorder %v170_v4, 8.507059e+37  ;;  %v202_v35 = vand.u32 2147483648, %v2153_v46 }
  0x87   :  { %v120_v40 = vadd.f32 %v1849_v17, %v119_v31  ;;  %v2202_v13 = vpop.xlane.xlu0 %64  ;;  %v173_v20 = vor.u32 1.1754944e-38, %v172_v5 }
  0x88   :  { %v1851_v18 = vpop.eup %1850 }
  0x89   :  { %v132_v21 = vmul.f32 %v1851_v18, %v101_v12  ;;  %vm137_vm3 = vweird.f32 %v1851_v18  ;;  %v2135_v37 = vpop.eup %1852  ;;  %v124_v51 = vsel %vm2139_vm4, %v1849_v17, %v120_v40  ;;  %v2188_v8 = vpop.xlane.xlu1 %66  ;;  %vm181_vm4 = vweird.f32 %v2150_v43 }
  0x8a   :  { %v2143_v42 = vpop.eup %1854  ;;  %vm2145_vm5 = vmor %vm136_vm2, %vm137_vm3  ;;  %v147_v49 = vmul.f32 %v2135_v37, %v2125_v24  ;;  %v129_v53 = vsel %vm126_vm6, %v128_v47, %v124_v51  ;;  %vm152_vm11 = vweird.f32 %v2135_v37  ;;  %v2212_v24 = vmax.f32 %v2202_v13, 1.0 }
  0x8b   :  { %v133_v27 = vsub.f32 1.0, %v132_v21  ;;  %v162_v50 = vmul.f32 %v2143_v42, %v2130_v26  ;;  %v2169_v57 = vsel %vm84_vm8, %v129_v53, 0.0  ;;  %v2173_v61 = vpop.eup %1856  ;;  %vm167_vm13 = vweird.f32 %v2143_v42  ;;  %vm2198_vm14 = vmor %vm151_vm10, %vm152_vm11 }
  0x8c   :  { %v148_v55 = vsub.f32 1.0, %v147_v49  ;;  %v2177_v0 = vpop.eup %1858  ;;  %v177_v9 = vmul.f32 %v2173_v61, %v2150_v43  ;;  %vm2204_vm15 = vmor %vm166_vm12, %vm167_vm13  ;;  %v158_v21 = vor.u32 1.1754944e-38, %v157_v6  ;;  %vm86_vm2 = vcmp.gt.f32.partialorder %v2116_v15, 0.0 }
  0x8d   :  { %v134_v30 = vmul.f32 %v1851_v18, %v133_v27  ;;  %v163_v54 = vsub.f32 1.0, %v162_v50  ;;  %v192_v10 = vmul.f32 %v2177_v0, %v2153_v46  ;;  %vm87_vm3 = vcmp.gt.f32.partialorder %v2122_v22, 0.0 }
  0x8e   :  { %v149_v63 = vmul.f32 %v2135_v37, %v148_v55  ;;  %v178_v29 = vsub.f32 1.0, %v177_v9  ;;  %vm196_vm6 = vweird.f32 %v2153_v46  ;;  %vm186_vm11 = vcmp.eq.f32.partialorder %v185_v36, 8.507059e+37 }
  0x8f   :  { %v135_v38 = vadd.f32 %v1851_v18, %v134_v30  ;;  %v164_v62 = vmul.f32 %v2143_v42, %v163_v54  ;;  %v193_v27 = vsub.f32 1.0, %v192_v10  ;;  %v2261_v54 = vpop.xlane.xlu2 %68  ;;  %vm88_vm12 = vcmp.gt.f32.partialorder %v2127_v25, 0.0 }
  0x90   :  { %v150_v11 = vadd.f32 %v2135_v37, %v149_v63  ;;  %v179_v34 = vmul.f32 %v2173_v61, %v178_v29  ;;  %vm89_vm13 = vcmp.gt.f32.partialorder %v2137_v39, 0.0  ;;  %v217_v12 = vand.u32 2147483648, %v2212_v24 }
  0x91   :  { %v139_v48 = vsel %vm2145_vm5, %v1851_v18, %v135_v38  ;;  %v165_v28 = vadd.f32 %v2143_v42, %v164_v62  ;;  %v2209_v18 = vmax.f32 %v2188_v8, 1.0  ;;  %v194_v33 = vmul.f32 %v2177_v0, %v193_v27  ;;  %v2328_v36 = vpop.xlane.xlu1 %72 }
  0x92   :  { %v144_v52 = vsel %vm141_vm7, %v143_v45, %v139_v48  ;;  %v154_v30 = vsel %vm2198_vm14, %v2135_v37, %v150_v11  ;;  %vm182_vm5 = vweird.f32 %v2173_v61  ;;  %v187_v37 = vand.u32 2147483648, %v2150_v43 }
  0x93   :  { %v2167_v56 = vsel %vm85_vm9, %v144_v52, 0.0  ;;  %v169_v26 = vsel %vm2204_vm15, %v2143_v42, %v165_v28  ;;  %1860 = vrcp.f32 %v2209_v18  ;;  %v159_v32 = vsel %vm156_vm0, %v158_v21, %v154_v30  ;;  %vm2250_vm8 = vmor %vm181_vm4, %vm182_vm5 }
  0x94   :  { %v174_v31 = vsel %vm171_vm1, %v173_v20, %v169_v26  ;;  %1862 = vrcp.f32 %v2212_v24  ;;  %vm197_vm7 = vweird.f32 %v2177_v0  ;;  %v2236_v40 = vsel %vm86_vm2, %v159_v32, 0.0 }
  0x95   :  { %v2230_v38 = vsel %vm87_vm3, %v174_v31, 0.0  ;;  %v200_v42 = vand.u32 2147483647, %v2153_v46  ;;  %v195_v48 = vadd.f32 %v2177_v0, %v194_v33  ;;  %v180_v49 = vadd.f32 %v2173_v61, %v179_v34  ;;  %vm2256_vm9 = vmor %vm196_vm6, %vm197_vm7  ;;  %630 = vmatmul.bf16.gmra.mxu1 %v1954_v14 }
  0x96   :  { %v203_v52 = vor.u32 1.1754944e-38, %v202_v35  ;;  %v188_v53 = vor.u32 1.1754944e-38, %v187_v37  ;;  %vm226_vm14 = vweird.f32 %v2209_v18  ;;  %vm211_vm0 = vweird.f32 %v2212_v24 }
  0x97   :  { %vm201_vm10 = vcmp.eq.f32.partialorder %v200_v42, 8.507059e+37  ;;  %v199_v43 = vsel %vm2256_vm9, %v2177_v0, %v195_v48  ;;  %v184_v55 = vsel %vm2250_vm8, %v2173_v61, %v180_v49  ;;  %v230_v28 = vand.u32 2147483647, %v2209_v18  ;;  %v2316_v31 = vpop.xlane.xlu2 %74 }
  0x98   :  { %v204_v62 = vsel %vm201_vm10, %v203_v52, %v199_v43  ;;  %v189_v63 = vsel %vm186_vm11, %v188_v53, %v184_v55  ;;  %v232_v10 = vand.u32 2147483648, %v2209_v18  ;;  %v215_v11 = vand.u32 2147483647, %v2212_v24 }
  0x99   :  { %v2242_v47 = vpop.eup %1860  ;;  %v2283_v4 = vsel %vm89_vm13, %v204_v62, 0.0  ;;  %v2285_v5 = vsel %vm88_vm12, %v189_v63, 0.0  ;;  %vm231_vm4 = vcmp.eq.f32.partialorder %v230_v28, 8.507059e+37  ;;  %v218_v30 = vor.u32 1.1754944e-38, %v217_v12 }
  0x9a   :  { %v2254_v50 = vpop.eup %1862  ;;  %vm227_vm15 = vweird.f32 %v2242_v47  ;;  %vm216_vm5 = vcmp.eq.f32.partialorder %v215_v11, 8.507059e+37  ;;  %vm91_vm6 = vcmp.gt.f32.partialorder %v2188_v8, 0.0  ;;  %v2332_v37 = vmax.f32 %v2316_v31, 1.0 }
  0x9b   :  { %v207_v23 = vmul.f32 %v2254_v50, %v2212_v24  ;;  %vm212_vm1 = vweird.f32 %v2254_v50  ;;  %vm2304_vm2 = vmor %vm226_vm14, %vm227_vm15  ;;  %v233_v24 = vor.u32 1.1754944e-38, %v232_v10  ;;  %vm90_vm7 = vcmp.gt.f32.partialorder %v2202_v13, 0.0 }
  0x9c   :  { %vm2311_vm3 = vmor %vm211_vm0, %vm212_vm1  ;;  %v2336_v42 = vmax.f32 %v2328_v36, 1.0  ;;  %vm92_vm0 = vcmp.gt.f32.partialorder %v2261_v54, 0.0  ;;  %v290_v29 = vand.u32 2147483647, %v2332_v37 }
  0x9d   :  { %v208_v2 = vsub.f32 1.0, %v207_v23 }
  0x9f   :  { %v209_v39 = vmul.f32 %v2254_v50, %v208_v2 }
  0xa0   :  { %v453_v44 = vpop.f32.mrf.mxu0 }
  0xa1   :  { %v493_v59 = vmul.f32 %v453_v44, %v2169_v57  ;;  %v463_v22 = vpop.f32.mrf.mxu1  ;;  %v210_v21 = vadd.f32 %v2254_v50, %v209_v39 }
  0xa2   :  { %v497_v6 = vmul.f32 %v463_v22, %v2285_v5 }
  0xa3   :  { %v214_v33 = vsel %vm2311_vm3, %v2254_v50, %v210_v21 }
  0xa5   :  { %635 = vmatmul.bf16.gmra.mxu1 %v1936_v7 }
  0xa7   :  { %v473_v13 = vpop.f32.mrf.mxu2 }
  0xa8   :  { %v455_v58 = vpop.f32.mrf.mxu0 }
  0xa9   :  { %v494_v60 = vmul.f32 %v455_v58, %v2167_v56  ;;  %v222_v58 = vmul.f32 %v2242_v47, %v2209_v18  ;;  %v465_v61 = vpop.f32.mrf.mxu1 }
  0xaa   :  { %v498_v9 = vmul.f32 %v465_v61, %v2283_v4 }
  0xab   :  { %v509_v1 = vpack.c.bf16 %v494_v60, %v493_v59  ;;  %v2273_v59 = vpop.xlane.xlu0 %70  ;;  %v2277_v60 = vmax.f32 %v2261_v54, 1.0 }
  0xac   :  { %v2281_v0 = vmax.f32 %v2273_v59, 1.0  ;;  %v511_v18 = vpack.c.bf16 %v498_v9, %v497_v6  ;;  %vm93_vm1 = vcmp.gt.f32.partialorder %v2273_v59, 0.0 }
  0xad   :  { %702 = vmatmul.bf16.vlgmr.msrb.gmra.mxu2 %v509_v1  ;;  %v223_v1 = vsub.f32 1.0, %v222_v58  ;;  %1864 = vrcp.f32 %v2277_v60  ;;  %vm241_vm10 = vweird.f32 %v2277_v60  ;;  %v245_v52 = vand.u32 2147483647, %v2277_v60 }
  0xae   :  { %1866 = vrcp.f32 %v2281_v0  ;;  %vm256_vm8 = vweird.f32 %v2281_v0  ;;  %v260_v46 = vand.u32 2147483647, %v2281_v0  ;;  %v247_v53 = vand.u32 2147483648, %v2277_v60 }
  0xaf   :  { %v224_v25 = vmul.f32 %v2242_v47, %v223_v1  ;;  %1868 = vrcp.f32 %v2332_v37  ;;  %vm246_vm15 = vcmp.eq.f32.partialorder %v245_v52, 8.507059e+37  ;;  %v2371_v1 = vpop.xlane.xlu1 %78  ;;  %v475_v9 = vpop.f32.mrf.mxu2 }
  0xb0   :  { %v458_v17 = vpop.f32.mrf.mxu0  ;;  %1870 = vrcp.f32 %v2336_v42  ;;  %vm261_vm14 = vcmp.eq.f32.partialorder %v260_v46, 8.507059e+37  ;;  %v248_v61 = vor.u32 1.1754944e-38, %v247_v53  ;;  %v2387_v28 = vmax.f32 %v2371_v1, 1.0 }
  0xb1   :  { %v495_v44 = vmul.f32 %v458_v17, %v2236_v40  ;;  %v225_v17 = vadd.f32 %v2242_v47, %v224_v25  ;;  %v468_v26 = vpop.f32.mrf.mxu1 }
  0xb2   :  { %1872 = vrcp.f32 %v2387_v28 }
  0xb3   :  { %v2301_v16 = vpop.eup %1864  ;;  %v229_v32 = vsel %vm2304_vm2, %v2242_v47, %v225_v17  ;;  %v2383_v6 = vpop.xlane.xlu0 %76  ;;  %vm286_vm2 = vweird.f32 %v2332_v37 }
  0xb4   :  { %v2309_v27 = vpop.eup %1866  ;;  %v237_v34 = vmul.f32 %v2301_v16, %v2277_v60  ;;  %v234_v22 = vsel %vm231_vm4, %v233_v24, %v229_v32  ;;  %vm242_vm11 = vweird.f32 %v2301_v16  ;;  %v2391_v12 = vmax.f32 %v2383_v6, 1.0 }
  0xb5   :  { %v252_v19 = vmul.f32 %v2309_v27, %v2281_v0  ;;  %vm257_vm9 = vweird.f32 %v2309_v27  ;;  %v2356_v43 = vpop.eup %1868  ;;  %vm2366_vm13 = vmor %vm241_vm10, %vm242_vm11  ;;  %vm271_vm4 = vweird.f32 %v2336_v42  ;;  %v277_v24 = vand.u32 2147483648, %v2336_v42  ;;  %640 = vmatmul.bf16.gmra.mxu1 %v1927_v3 }
  0xb6   :  { %vm2359_vm12 = vmor %vm256_vm8, %vm257_vm9  ;;  %v2364_v62 = vpop.eup %1870  ;;  %v282_v39 = vmul.f32 %v2356_v43, %v2332_v37  ;;  %1874 = vrcp.f32 %v2391_v12  ;;  %vm287_vm3 = vweird.f32 %v2356_v43  ;;  %vm291_vm8 = vcmp.eq.f32.partialorder %v290_v29, 8.507059e+37  ;;  %v1803_v29 = vld [vmem:[%s2841_s3 + $0x70] sm:$0xff] }
  0xb7   :  { %v253_v35 = vsub.f32 1.0, %v252_v19  ;;  %v267_v14 = vmul.f32 %v2364_v62, %v2336_v42  ;;  %v275_v19 = vand.u32 2147483647, %v2336_v42  ;;  %vm95_vm10 = vcmp.gt.f32.partialorder %v2316_v31, 0.0 }
  0xb8   :  { %v460_v41 = vpop.f32.mrf.mxu0  ;;  %vm94_vm11 = vcmp.gt.f32.partialorder %v2328_v36, 0.0 }
  0xb9   :  { %v496_v45 = vmul.f32 %v460_v41, %v2230_v38  ;;  %v219_v41 = vsel %vm216_vm5, %v218_v30, %v214_v33  ;;  %v470_v48 = vpop.f32.mrf.mxu1  ;;  %v254_v8 = vmul.f32 %v2309_v27, %v253_v35  ;;  %v268_v17 = vsub.f32 1.0, %v267_v14  ;;  %v2410_v30 = vpop.eup %1872 }
  0xba   :  { %v2340_v47 = vsel %vm90_vm7, %v219_v41, 0.0  ;;  %vm272_vm5 = vweird.f32 %v2364_v62  ;;  %vm276_vm9 = vcmp.eq.f32.partialorder %v275_v19, 8.507059e+37 }
  0xbb   :  { %v510_v51 = vpack.c.bf16 %v496_v45, %v495_v44  ;;  %v238_v44 = vsub.f32 1.0, %v237_v34  ;;  %v2338_v45 = vsel %vm91_vm6, %v234_v22, 0.0  ;;  %v499_v15 = vmul.f32 %v468_v26, %v2340_v47  ;;  %vm2413_vm6 = vmor %vm286_vm2, %vm287_vm3  ;;  %v478_v22 = vpop.f32.mrf.mxu2 }
  0xbc   :  { %v500_v50 = vmul.f32 %v470_v48, %v2338_v45  ;;  %v255_v55 = vadd.f32 %v2309_v27, %v254_v8  ;;  %v269_v26 = vmul.f32 %v2364_v62, %v268_v17  ;;  %v2419_v41 = vpop.eup %1874  ;;  %vm2421_vm7 = vmor %vm271_vm4, %vm272_vm5  ;;  %v278_v48 = vor.u32 1.1754944e-38, %v277_v24 }
  0xbd   :  { %707 = vmatmul.bf16.gmra.mxu2 %v510_v51  ;;  %v239_v49 = vmul.f32 %v2301_v16, %v238_v44  ;;  %v262_v51 = vand.u32 2147483648, %v2281_v0  ;;  %v312_v8 = vmul.f32 %v2410_v30, %v2387_v28  ;;  %v297_v7 = vmul.f32 %v2419_v41, %v2391_v12 }
  0xbe   :  { %v512_v0 = vpack.c.bf16 %v500_v50, %v499_v15  ;;  %v259_v2 = vsel %vm2359_vm12, %v2309_v27, %v255_v55  ;;  %v270_v34 = vadd.f32 %v2364_v62, %v269_v26  ;;  %v2438_v15 = vpop.xlane.xlu0 %82  ;;  %vm316_vm12 = vweird.f32 %v2387_v28 }
  0xbf   :  { %v240_v23 = vadd.f32 %v2301_v16, %v239_v49  ;;  %v263_v60 = vor.u32 1.1754944e-38, %v262_v51  ;;  %v2428_v49 = vpop.xlane.xlu2 %80  ;;  %v313_v52 = vsub.f32 1.0, %v312_v8  ;;  %v2446_v53 = vmax.f32 %v2438_v15, 1.0 }
  0xc0   :  { %v2443_v50 = vmax.f32 %v2428_v49, 1.0  ;;  %vm97_vm4 = vcmp.gt.f32.partialorder %v2371_v1, 0.0  ;;  %vm96_vm5 = vcmp.gt.f32.partialorder %v2383_v6, 0.0 }
  0xc1   :  { %v244_v25 = vsel %vm2366_vm13, %v2301_v16, %v240_v23  ;;  %v264_v10 = vsel %vm261_vm14, %v263_v60, %v259_v2  ;;  %v283_v16 = vsub.f32 1.0, %v282_v39  ;;  %v314_v31 = vmul.f32 %v2410_v30, %v313_v52 }
  0xc2   :  { %v249_v11 = vsel %vm246_vm15, %v248_v61, %v244_v25  ;;  %v2393_v20 = vsel %vm93_vm1, %v264_v10, 0.0  ;;  %1876 = vrcp.f32 %v2443_v50  ;;  %vm317_vm13 = vweird.f32 %v2410_v30 }
  0xc3   :  { %v2395_v21 = vsel %vm92_vm0, %v249_v11, 0.0  ;;  %v284_v54 = vmul.f32 %v2356_v43, %v283_v16  ;;  %v502_v27 = vmul.f32 %v475_v9, %v2393_v20  ;;  %v480_v23 = vpop.f32.mrf.mxu2  ;;  %1878 = vrcp.f32 %v2446_v53  ;;  %vm2468_vm0 = vmor %vm316_vm12, %vm317_vm13 }
  0xc4   :  { %v501_v59 = vmul.f32 %v473_v13, %v2395_v21  ;;  %v274_v13 = vsel %vm2421_vm7, %v2364_v62, %v270_v34  ;;  %v483_v62 = vpop.f32.mrf.mxu3  ;;  %vm301_vm14 = vweird.f32 %v2391_v12  ;;  %vm302_vm15 = vweird.f32 %v2419_v41  ;;  %v1802_v34 = vld [vmem:[%s2841_s3 + $0x68] sm:$0xff] }
  0xc5   :  { %v285_v32 = vadd.f32 %v2356_v43, %v284_v54  ;;  %v279_v51 = vsel %vm276_vm9, %v278_v48, %v274_v13  ;;  %v315_v60 = vadd.f32 %v2410_v30, %v314_v31  ;;  %v320_v61 = vand.u32 2147483647, %v2387_v28  ;;  %vm2474_vm1 = vmor %vm301_vm14, %vm302_vm15 }
  0xc6   :  { %v2450_v58 = vsel %vm94_vm11, %v279_v51, 0.0  ;;  %v322_v2 = vand.u32 2147483648, %v2387_v28  ;;  %v307_v25 = vand.u32 2147483648, %v2391_v12  ;;  %v305_v10 = vand.u32 2147483647, %v2391_v12  ;;  %v1804_v12 = vld [vmem:[%s2841_s3 + $0x78] sm:$0xff] }
  0xc7   :  { %v289_v42 = vsel %vm2413_vm6, %v2356_v43, %v285_v32  ;;  %v298_v43 = vsub.f32 1.0, %v297_v7  ;;  %v503_v63 = vmul.f32 %v478_v22, %v2450_v58  ;;  %v319_v28 = vsel %vm2468_vm0, %v2410_v30, %v315_v60  ;;  %942 = vmatpush.bf16.msrb.mxu0 %v1804_v12 }
  0xc8   :  { %v2466_v39 = vpop.eup %1876  ;;  %vm321_vm2 = vcmp.eq.f32.partialorder %v320_v61, 8.507059e+37  ;;  %v323_v54 = vor.u32 1.1754944e-38, %v322_v2  ;;  %v308_v26 = vor.u32 1.1754944e-38, %v307_v25  ;;  %vm306_vm3 = vcmp.eq.f32.partialorder %v305_v10, 8.507059e+37  ;;  %v1799_v2 = vld [vmem:[%s2841_s3 + $0x50] sm:$0xff] }
  0xc9   :  { %v299_v36 = vmul.f32 %v2419_v41, %v298_v43  ;;  %v1879_v11 = vpop.eup %1878  ;;  %v327_v3 = vmul.f32 %v2466_v39, %v2443_v50  ;;  %vm331_vm6 = vweird.f32 %v2443_v50  ;;  %vm332_vm7 = vweird.f32 %v2466_v39 }
  0xca   :  { %v324_v24 = vsel %vm321_vm2, %v323_v54, %v319_v28  ;;  %vm347_vm9 = vweird.f32 %v1879_v11  ;;  %v352_v48 = vand.u32 2147483648, %v2446_v53  ;;  %v335_v13 = vand.u32 2147483647, %v2443_v50  ;;  %v2547_v28 = vld [vmem:[%s2843_s4] ss:$0 sm:$0xff] }
  0xcb   :  { %v300_v9 = vadd.f32 %v2419_v41, %v299_v36  ;;  %v328_v32 = vsub.f32 1.0, %v327_v3  ;;  %943 = vmatpush.bf16.msrb.mxu0 %v1803_v29  ;;  %v2499_v19 = vsel %vm97_vm4, %v324_v24, 0.0  ;;  %vm98_vm14 = vcmp.gt.f32.partialorder %v2428_v49, 0.0 }
  0xcc   :  { %vm336_vm12 = vcmp.eq.f32.partialorder %v335_v13, 8.507059e+37  ;;  %vm99_vm15 = vcmp.gt.f32.partialorder %v2438_v15, 0.0  ;;  %v1798_v15 = vld [vmem:[%s2841_s3 + $0x48] sm:$0xff] }
  0xcd   :  { %712 = vmatmul.bf16.gmra.mxu2 %v511_v18  ;;  %v292_v18 = vand.u32 2147483648, %v2332_v37  ;;  %v513_v37 = vpack.c.bf16 %v502_v27, %v501_v59  ;;  %v304_v59 = vsel %vm2474_vm1, %v2419_v41, %v300_v9  ;;  %v342_v27 = vmul.f32 %v1879_v11, %v2446_v53  ;;  %v1797_v9 = vld [vmem:[%s2841_s3 + $0x40] sm:$0xff] }
  0xce   :  { %v309_v30 = vsel %vm306_vm3, %v308_v26, %v304_v59  ;;  %v329_v41 = vmul.f32 %v2466_v39, %v328_v32 }
  0xcf   :  { %v293_v44 = vor.u32 1.1754944e-38, %v292_v18  ;;  %v485_v18 = vpop.f32.mrf.mxu3  ;;  %v343_v33 = vsub.f32 1.0, %v342_v27  ;;  %v2501_v22 = vsel %vm96_vm5, %v309_v30, 0.0  ;;  %944 = vmatpush.bf16.msrb.mxu0 %v1802_v34 }
  0xd0   :  { %v505_v1 = vmul.f32 %v483_v62, %v2501_v22  ;;  %v506_v6 = vmul.f32 %v485_v18, %v2499_v19  ;;  %v330_v8 = vadd.f32 %v2466_v39, %v329_v41 }
  0xd1   :  { %v294_v46 = vsel %vm291_vm8, %v293_v44, %v289_v42  ;;  %v344_v35 = vmul.f32 %v1879_v11, %v343_v33  ;;  %vm346_vm8 = vweird.f32 %v2446_v53  ;;  %v337_v44 = vand.u32 2147483648, %v2443_v50  ;;  %v1800_v50 = vld [vmem:[%s2841_s3 + $0x58] sm:$0xff] }
  0xd2   :  { %v2448_v55 = vsel %vm95_vm10, %v294_v46, 0.0  ;;  %vm2515_vm10 = vmor %vm331_vm6, %vm332_vm7  ;;  %v350_v46 = vand.u32 2147483647, %v2446_v53  ;;  %v515_v52 = vpack.c.bf16 %v506_v6, %v505_v1 }
  0xd3   :  { %v345_v7 = vadd.f32 %v1879_v11, %v344_v35  ;;  %vm348_vm11 = vmor %vm346_vm8, %vm347_vm9  ;;  %v338_v43 = vor.u32 1.1754944e-38, %v337_v44  ;;  %v334_v31 = vsel %vm2515_vm10, %v2466_v39, %v330_v8 }
  0xd4   :  { %vm351_vm13 = vcmp.eq.f32.partialorder %v350_v46, 8.507059e+37 }
  0xd5   :  { %v349_v36 = vsel %vm348_vm11, %v1879_v11, %v345_v7  ;;  %v339_v53 = vsel %vm336_vm12, %v338_v43, %v334_v31 }
  0xd7   :  { %v488_v51 = vpop.f32.mrf.mxu3 }
  0xdd   :  { %717 = vmatmul.bf16.gmra.mxu2 %v512_v0  ;;  %v504_v0 = vmul.f32 %v480_v23, %v2448_v55  ;;  %v353_v23 = vor.u32 1.1754944e-38, %v352_v48 }
  0xdf   :  { %v514_v17 = vpack.c.bf16 %v504_v0, %v503_v63  ;;  %v354_v62 = vsel %vm351_vm13, %v353_v23, %v349_v36  ;;  %v606_v63 = vpop.f32.mrf.mxu1  ;;  %v2529_v0 = vsel %vm98_vm14, %v339_v53, 0.0  ;;  %v490_v61 = vpop.f32.mrf.mxu3 }
  0xe0   :  { %v2531_v60 = vsel %vm99_vm15, %v354_v62, 0.0  ;;  %v507_v25 = vmul.f32 %v488_v51, %v2529_v0 }
  0xe1   :  { %v508_v49 = vmul.f32 %v490_v61, %v2531_v60 }
  0xe3   :  { %v516_v39 = vpack.c.bf16 %v508_v49, %v507_v25 }
  0xe7   :  { %v608_v14 = vpop.f32.mrf.mxu1 }
  0xed   :  { %722 = vmatmul.bf16.gmra.mxu2 %v513_v37  ;;  %v1801_v37 = vld [vmem:[%s2841_s3 + $0x60] sm:$0xff] }
  0xee   :  { %945 = vmatpush.bf16.msrb.mxu0 %v1801_v37 }
  0xef   :  { %v611_v10 = vpop.f32.mrf.mxu1 }
  0xf2   :  { %946 = vmatpush.bf16.msrb.mxu0 %v1800_v50 }
  0xf6   :  { %947 = vmatpush.bf16.msrb.mxu0 %v1799_v2 }
  0xf7   :  { %v613_v16 = vpop.f32.mrf.mxu1 }
  0xfa   :  { %948 = vmatpush.bf16.msrb.mxu0 %v1798_v15 }
  0xfd   :  { %727 = vmatmul.bf16.gmra.mxu2 %v514_v17 }
  0xfe   :  { %949 = vmatpush.bf16.msrb.mxu0 %v1797_v9 }
  0xff   :  { %v616_v59 = vpop.f32.mrf.mxu1 }
 0x107   :  { %v618_v30 = vpop.f32.mrf.mxu1 }
 0x10d   :  { %732 = vmatmul.bf16.gmra.mxu2 %v515_v52 }
 0x10f   :  { %v621_v37 = vpop.f32.mrf.mxu1 }
 0x117   :  { %v623_v13 = vpop.f32.mrf.mxu1 }
 0x11d   :  { %737 = vmatmul.bf16.gmra.mxu2 %v516_v39 }
 0x11f   :  { %v626_v36 = vpop.f32.mrf.mxu1 }
 0x127   :  { %v628_v2 = vpop.f32.mrf.mxu1 }
 0x12f   :  { %v631_v9 = vpop.f32.mrf.mxu1 }
 0x130   :  { %v703_v11 = vpop.f32.mrf.mxu2 }
 0x131   :  { %v704_v17 = vadd.f32 %v703_v11, %v606_v63 }
 0x133   :  { %v747_v26 = vadd.f32 %v2547_v28, %v704_v17 }
 0x135   :  { %v763_v27 = vmax.f32 %v747_v26, 0.0 }
 0x138   :  { %v705_v54 = vpop.f32.mrf.mxu2 }
 0x139   :  { %v706_v12 = vadd.f32 %v705_v54, %v608_v14 }
 0x13b   :  { %v748_v3 = vadd.f32 %v2547_v28, %v706_v12 }
 0x13d   :  { %v764_v29 = vmax.f32 %v748_v3, 0.0 }
 0x13f   :  { %v2551_v18 = vpack.c.bf16 %v764_v29, %v763_v27 }
 0x140   :  { %v708_v24 = vpop.f32.mrf.mxu2 }
 0x141   :  { %950 = vmatmul.bf16.vlgmr.msrb.gmra.mxu0 %v2551_v18  ;;  %v709_v32 = vadd.f32 %v708_v24, %v611_v10 }
 0x143   :  { %v749_v34 = vadd.f32 %v2547_v28, %v709_v32 }
 0x145   :  { %v765_v1 = vmax.f32 %v749_v34, 0.0 }
 0x148   :  { %v710_v33 = vpop.f32.mrf.mxu2 }
 0x149   :  { %v711_v41 = vadd.f32 %v710_v33, %v613_v16 }
 0x14b   :  { %v750_v35 = vadd.f32 %v2547_v28, %v711_v41 }
 0x14d   :  { %v766_v6 = vmax.f32 %v750_v35, 0.0 }
 0x14f   :  { %v2556_v44 = vpack.c.bf16 %v766_v6, %v765_v1 }
 0x150   :  { %v713_v48 = vpop.f32.mrf.mxu2 }
 0x151   :  { %955 = vmatmul.bf16.gmra.mxu0 %v2556_v44  ;;  %v714_v8 = vadd.f32 %v713_v48, %v616_v59  ;;  %v633_v59 = vpop.f32.mrf.mxu1 }
 0x153   :  { %v751_v7 = vadd.f32 %v2547_v28, %v714_v8 }
 0x155   :  { %v767_v52 = vmax.f32 %v751_v7, 0.0 }
 0x158   :  { %v715_v42 = vpop.f32.mrf.mxu2 }
 0x159   :  { %v716_v46 = vadd.f32 %v715_v42, %v618_v30  ;;  %v636_v32 = vpop.f32.mrf.mxu1 }
 0x15b   :  { %v752_v51 = vadd.f32 %v2547_v28, %v716_v46 }
 0x15d   :  { %v768_v43 = vmax.f32 %v752_v51, 0.0 }
 0x15f   :  { %v2561_v23 = vpack.c.bf16 %v768_v43, %v767_v52 }
 0x160   :  { %v718_v31 = vpop.f32.mrf.mxu2 }
 0x161   :  { %960 = vmatmul.bf16.gmra.mxu0 %v2561_v23  ;;  %v719_v50 = vadd.f32 %v718_v31, %v621_v37  ;;  %v638_v6 = vpop.f32.mrf.mxu1 }
 0x163   :  { %v753_v62 = vadd.f32 %v2547_v28, %v719_v50 }
 0x165   :  { %v769_v25 = vmax.f32 %v753_v62, 0.0 }
 0x168   :  { %v720_v53 = vpop.f32.mrf.mxu2 }
 0x169   :  { %v721_v63 = vadd.f32 %v720_v53, %v623_v13  ;;  %v641_v51 = vpop.f32.mrf.mxu1 }
 0x16b   :  { %v754_v61 = vadd.f32 %v2547_v28, %v721_v63 }
 0x16d   :  { %v770_v49 = vmax.f32 %v754_v61, 0.0 }
 0x16f   :  { %v782_v15 = vpack.c.bf16 %v770_v49, %v769_v25  ;;  %v2580_v49 = vld [vmem:[%s2840_s0] sm:$0xff] }
 0x170   :  { %v723_v39 = vpop.f32.mrf.mxu2 }
 0x171   :  { %965 = vmatmul.bf16.gmra.mxu0 %v782_v15  ;;  %v724_v14 = vadd.f32 %v723_v39, %v626_v36  ;;  %v643_v36 = vpop.f32.mrf.mxu1  ;;  %v2613_v39 = vld [vmem:[%s2840_s0 + $0x28] sm:$0xff] }
 0x173   :  { %v755_v11 = vadd.f32 %v2547_v28, %v724_v14  ;;  %v1795_v14 = vld [vmem:[%s2842_s2 + $0x70] sm:$0xff] }
 0x175   :  { %v771_v54 = vmax.f32 %v755_v11, 0.0  ;;  %v1792_v11 = vld [vmem:[%s2842_s2 + $0x58] sm:$0xff] }
 0x178   :  { %v725_v10 = vpop.f32.mrf.mxu2 }
 0x179   :  { %v726_v16 = vadd.f32 %v725_v10, %v628_v2  ;;  %v1793_v10 = vld [vmem:[%s2842_s2 + $0x60] sm:$0xff] }
 0x17b   :  { %v756_v17 = vadd.f32 %v2547_v28, %v726_v16  ;;  %v2631_v16 = vld [vmem:[%s2840_s0 + $0x30] sm:$0xff] }
 0x17d   :  { %v772_v26 = vmax.f32 %v756_v17, 0.0  ;;  %v1791_v17 = vld [vmem:[%s2842_s2 + $0x50] sm:$0xff] }
 0x17f   :  { %v783_v12 = vpack.c.bf16 %v772_v26, %v771_v54  ;;  %v1790_v54 = vld [vmem:[%s2842_s2 + $0x48] sm:$0xff]  ;;  %v1789_v26 = vld [vmem:[%s2842_s2 + $0x40] sm:$0xff] }
 0x180   :  { %v728_v3 = vpop.f32.mrf.mxu2 }
 0x181   :  { %970 = vmatmul.bf16.gmra.mxu0 %v783_v12  ;;  %v729_v27 = vadd.f32 %v728_v3, %v631_v9  ;;  %v1794_v9 = vld [vmem:[%s2842_s2 + $0x68] sm:$0xff] }
 0x183   :  { %v757_v24 = vadd.f32 %v2547_v28, %v729_v27 }
 0x185   :  { %v773_v34 = vmax.f32 %v757_v24, 0.0 }
 0x188   :  { %v730_v29 = vpop.f32.mrf.mxu2 }
 0x189   :  { %v731_v30 = vadd.f32 %v730_v29, %v633_v59 }
 0x18b   :  { %v758_v33 = vadd.f32 %v2547_v28, %v731_v30 }
 0x18d   :  { %v774_v41 = vmax.f32 %v758_v33, 0.0 }
 0x18f   :  { %v784_v35 = vpack.c.bf16 %v774_v41, %v773_v34 }
 0x190   :  { %v733_v1 = vpop.f32.mrf.mxu2 }
 0x191   :  { %975 = vmatmul.bf16.gmra.mxu0 %v784_v35  ;;  %v734_v37 = vadd.f32 %v733_v1, %v636_v32 }
 0x193   :  { %v759_v8 = vadd.f32 %v2547_v28, %v734_v37 }
 0x195   :  { %v775_v7 = vmax.f32 %v759_v8, 0.0 }
 0x198   :  { %v735_v48 = vpop.f32.mrf.mxu2 }
 0x199   :  { %v736_v42 = vadd.f32 %v735_v48, %v638_v6 }
 0x19b   :  { %v760_v13 = vadd.f32 %v2547_v28, %v736_v42 }
 0x19d   :  { %v776_v46 = vmax.f32 %v760_v13, 0.0 }
 0x19f   :  { %v785_v52 = vpack.c.bf16 %v776_v46, %v775_v7 }
 0x1a0   :  { %v738_v43 = vpop.f32.mrf.mxu2 }
 0x1a1   :  { %980 = vmatmul.bf16.gmra.mxu0 %v785_v52  ;;  %v739_v31 = vadd.f32 %v738_v43, %v641_v51 }
 0x1a3   :  { %v761_v53 = vadd.f32 %v2547_v28, %v739_v31 }
 0x1a5   :  { %v777_v61 = vmax.f32 %v761_v53, 0.0 }
 0x1a8   :  { %v740_v50 = vpop.f32.mrf.mxu2 }
 0x1a9   :  { %v741_v62 = vadd.f32 %v740_v50, %v643_v36 }
 0x1ab   :  { %v762_v63 = vadd.f32 %v2547_v28, %v741_v62  ;;  %v2586_v28 = vld [vmem:[%s2840_s0 + $0x8] sm:$0xff] }
 0x1ad   :  { %v778_v2 = vmax.f32 %v762_v63, 0.0 }
 0x1af   :  { %v786_v25 = vpack.c.bf16 %v778_v2, %v777_v61  ;;  %v1820_v61 = vld [vmem:[%s2841_s3 + $0xb8] sm:$0xff] }
 0x1b1   :  { %787 = vmatpush.bf16.msrb.mxu3 %v786_v25  ;;  %985 = vmatmul.bf16.gmra.mxu0 %v786_v25  ;;  %v1819_v25 = vld [vmem:[%s2841_s3 + $0xb0] sm:$0xff] }
 0x1b5   :  { %788 = vmatpush.bf16.msrb.mxu3 %v785_v52 }
 0x1b9   :  { %789 = vmatpush.bf16.msrb.mxu3 %v784_v35 }
 0x1bd   :  { %790 = vmatpush.bf16.msrb.mxu3 %v783_v12  ;;  %v2646_v12 = vld [vmem:[%s2840_s0 + $0x38] sm:$0xff] }
 0x1c1   :  { %791 = vmatpush.bf16.msrb.mxu3 %v782_v15  ;;  %v1796_v15 = vld [vmem:[%s2842_s2 + $0x78] sm:$0xff] }
 0x1c2   :  { %1039 = vmatpush.bf16.msra.mxu1 %v1796_v15 }
 0x1c5   :  { %792 = vmatpush.bf16.msrb.mxu3 %v2561_v23  ;;  %v2604_v23 = vld [vmem:[%s2840_s0 + $0x20] sm:$0xff] }
 0x1c6   :  { %1040 = vmatpush.bf16.msra.mxu1 %v1795_v14  ;;  %v1818_v14 = vld [vmem:[%s2841_s3 + $0xa8] sm:$0xff] }
 0x1c9   :  { %793 = vmatpush.bf16.msrb.mxu3 %v2556_v44  ;;  %v2592_v44 = vld [vmem:[%s2840_s0 + $0x10] sm:$0xff] }
 0x1ca   :  { %1041 = vmatpush.bf16.msra.mxu1 %v1794_v9  ;;  %v1817_v9 = vld [vmem:[%s2841_s3 + $0xa0] sm:$0xff] }
 0x1cd   :  { %794 = vmatpush.bf16.msrb.mxu3 %v2551_v18  ;;  %v2598_v18 = vld [vmem:[%s2840_s0 + $0x18] sm:$0xff] }
 0x1ce   :  { %1042 = vmatpush.bf16.msra.mxu1 %v1793_v10 }
 0x1d0   :  { %795 = vmatmul.bf16.vlgmr.msrb.gmra.mxu3 %v2580_v49 }
 0x1d1   :  { %1288 = vmatpush.bf16.msra.mxu3 %v1820_v61 }
 0x1d2   :  { %1043 = vmatpush.bf16.msra.mxu1 %v1792_v11 }
 0x1d5   :  { %1289 = vmatpush.bf16.msra.mxu3 %v1819_v25 }
 0x1d6   :  { %1044 = vmatpush.bf16.msra.mxu1 %v1791_v17 }
 0x1d9   :  { %1290 = vmatpush.bf16.msra.mxu3 %v1818_v14 }
 0x1da   :  { %1045 = vmatpush.bf16.msra.mxu1 %v1790_v54  ;;  %v1816_v54 = vld [vmem:[%s2841_s3 + $0x98] sm:$0xff] }
 0x1dd   :  { %1291 = vmatpush.bf16.msra.mxu3 %v1817_v9 }
 0x1de   :  { %1046 = vmatpush.bf16.msra.mxu1 %v1789_v26 }
 0x1e0   :  { %800 = vmatmul.bf16.gmra.mxu3 %v2586_v28 }
 0x1e1   :  { %1292 = vmatpush.bf16.msra.mxu3 %v1816_v54 }
 0x1f0   :  { %805 = vmatmul.bf16.gmra.mxu3 %v2592_v44 }
 0x200   :  { %810 = vmatmul.bf16.gmra.mxu3 %v2598_v18 }
 0x210   :  { %815 = vmatmul.bf16.gmra.mxu3 %v2604_v23 }
 0x220   :  { %820 = vmatmul.bf16.gmra.mxu3 %v2613_v39 }
 0x230   :  { %825 = vmatmul.bf16.gmra.mxu3 %v2631_v16 }
 0x240   :  { %830 = vmatmul.bf16.gmra.mxu3 %v2646_v12 }
 0x253   :  { %v796_v59 = vpop.f32.mrf.mxu3 }
 0x254   :  { %v836_v27 = vmul.f32 %v796_v59, %v2169_v57  ;;  %v951_v59 = vpop.f32.mrf.mxu0 }
 0x25b   :  { %v798_v3 = vpop.f32.mrf.mxu3 }
 0x25c   :  { %v837_v29 = vmul.f32 %v798_v3, %v2167_v56  ;;  %v1815_v3 = vld [vmem:[%s2841_s3 + $0x90] sm:$0xff] }
 0x25d   :  { %1293 = vmatpush.bf16.msra.mxu3 %v1815_v3 }
 0x25e   :  { %v852_v24 = vpack.c.bf16 %v837_v29, %v836_v27  ;;  %v1814_v29 = vld [vmem:[%s2841_s3 + $0x88] sm:$0xff] }
 0x260   :  { %1047 = vmatmul.bf16.vlgmr.msra.gmra.mxu1 %v852_v24  ;;  %v953_v24 = vpop.f32.mrf.mxu0 }
 0x261   :  { %1294 = vmatpush.bf16.msra.mxu3 %v1814_v29 }
 0x263   :  { %v801_v30 = vpop.f32.mrf.mxu3 }
 0x264   :  { %v838_v33 = vmul.f32 %v801_v30, %v2236_v40  ;;  %v1813_v30 = vld [vmem:[%s2841_s3 + $0x80] sm:$0xff] }
 0x265   :  { %1295 = vmatpush.bf16.msra.mxu3 %v1813_v30 }
 0x26b   :  { %v803_v32 = vpop.f32.mrf.mxu3 }
 0x26c   :  { %v839_v34 = vmul.f32 %v803_v32, %v2230_v38 }
 0x26e   :  { %v853_v41 = vpack.c.bf16 %v839_v34, %v838_v33 }
 0x270   :  { %1052 = vmatmul.bf16.gmra.mxu1 %v853_v41 }
 0x273   :  { %v806_v35 = vpop.f32.mrf.mxu3 }
 0x274   :  { %v840_v6 = vmul.f32 %v806_v35, %v2285_v5  ;;  %v956_v35 = vpop.f32.mrf.mxu0 }
 0x27b   :  { %v808_v1 = vpop.f32.mrf.mxu3 }
 0x27c   :  { %v841_v37 = vmul.f32 %v808_v1, %v2283_v4  ;;  %v958_v1 = vpop.f32.mrf.mxu0 }
 0x27e   :  { %v854_v48 = vpack.c.bf16 %v841_v37, %v840_v6 }
 0x280   :  { %1057 = vmatmul.bf16.gmra.mxu1 %v854_v48  ;;  %v2692_v48 = vld [vmem:[%s2843_s4 + $0x1] ss:$0 sm:$0xff] }
 0x283   :  { %v811_v8 = vpop.f32.mrf.mxu3 }
 0x284   :  { %v842_v13 = vmul.f32 %v811_v8, %v2340_v47 }
 0x28b   :  { %v813_v42 = vpop.f32.mrf.mxu3 }
 0x28c   :  { %v843_v7 = vmul.f32 %v813_v42, %v2338_v45 }
 0x28e   :  { %v855_v46 = vpack.c.bf16 %v843_v7, %v842_v13  ;;  %v961_v7 = vpop.f32.mrf.mxu0 }
 0x290   :  { %1062 = vmatmul.bf16.gmra.mxu1 %v855_v46 }
 0x293   :  { %v816_v51 = vpop.f32.mrf.mxu3 }
 0x294   :  { %v844_v43 = vmul.f32 %v816_v51, %v2395_v21 }
 0x29b   :  { %v818_v52 = vpop.f32.mrf.mxu3 }
 0x29c   :  { %v845_v31 = vmul.f32 %v818_v52, %v2393_v20 }
 0x29e   :  { %v856_v36 = vpack.c.bf16 %v845_v31, %v844_v43 }
 0x2a0   :  { %1067 = vmatmul.bf16.gmra.mxu1 %v856_v36  ;;  %v963_v36 = vpop.f32.mrf.mxu0 }
 0x2a3   :  { %v821_v50 = vpop.f32.mrf.mxu3 }
 0x2a4   :  { %v846_v62 = vmul.f32 %v821_v50, %v2450_v58 }
 0x2ab   :  { %v823_v53 = vpop.f32.mrf.mxu3 }
 0x2ac   :  { %v847_v63 = vmul.f32 %v823_v53, %v2448_v55 }
 0x2ae   :  { %v857_v2 = vpack.c.bf16 %v847_v63, %v846_v62 }
 0x2b0   :  { %1072 = vmatmul.bf16.gmra.mxu1 %v857_v2 }
 0x2b3   :  { %v826_v15 = vpop.f32.mrf.mxu3 }
 0x2b4   :  { %v848_v11 = vmul.f32 %v826_v15, %v2501_v22  ;;  %v966_v15 = vpop.f32.mrf.mxu0 }
 0x2bb   :  { %v828_v10 = vpop.f32.mrf.mxu3 }
 0x2bc   :  { %v849_v17 = vmul.f32 %v828_v10, %v2499_v19 }
 0x2be   :  { %v858_v26 = vpack.c.bf16 %v849_v17, %v848_v11  ;;  %v968_v11 = vpop.f32.mrf.mxu0 }
 0x2c0   :  { %1077 = vmatmul.bf16.gmra.mxu1 %v858_v26 }
 0x2c3   :  { %v831_v27 = vpop.f32.mrf.mxu3 }
 0x2c4   :  { %v850_v33 = vmul.f32 %v831_v27, %v2529_v0 }
 0x2c6   :  { %v971_v30 = vpop.f32.mrf.mxu0 }
 0x2cb   :  { %v833_v32 = vpop.f32.mrf.mxu3 }
 0x2cc   :  { %v851_v34 = vmul.f32 %v833_v32, %v2531_v60 }
 0x2ce   :  { %v859_v41 = vpack.c.bf16 %v851_v34, %v850_v33 }
 0x2d0   :  { %1082 = vmatmul.bf16.gmra.mxu1 %v859_v41 }
 0x2dd   :  { %v1048_v6 = vpop.f32.mrf.mxu1 }
 0x2de   :  { %v1049_v37 = vadd.f32 %v1048_v6, %v951_v59 }
 0x2e0   :  { %v1093_v42 = vadd.f32 %v2692_v48, %v1049_v37 }
 0x2e2   :  { %v1109_v51 = vmax.f32 %v1093_v42, 0.0 }
 0x2e5   :  { %v1050_v8 = vpop.f32.mrf.mxu1 }
 0x2e6   :  { %v1051_v13 = vadd.f32 %v1050_v8, %v953_v24 }
 0x2e8   :  { %v1094_v46 = vadd.f32 %v2692_v48, %v1051_v13 }
 0x2ea   :  { %v1110_v52 = vmax.f32 %v1094_v46, 0.0 }
 0x2ec   :  { %v2696_v43 = vpack.c.bf16 %v1110_v52, %v1109_v51 }
 0x2ed   :  { %v1053_v31 = vpop.f32.mrf.mxu1 }
 0x2ee   :  { %1296 = vmatmul.bf16.vlgmr.msra.gmra.mxu3 %v2696_v43  ;;  %v1054_v50 = vadd.f32 %v1053_v31, %v956_v35 }
 0x2f0   :  { %v1095_v62 = vadd.f32 %v2692_v48, %v1054_v50 }
 0x2f2   :  { %v1111_v2 = vmax.f32 %v1095_v62, 0.0 }
 0x2f5   :  { %v1055_v53 = vpop.f32.mrf.mxu1 }
 0x2f6   :  { %v1056_v63 = vadd.f32 %v1055_v53, %v958_v1  ;;  %v973_v1 = vpop.f32.mrf.mxu0 }
 0x2f8   :  { %v1096_v61 = vadd.f32 %v2692_v48, %v1056_v63 }
 0x2fa   :  { %v1112_v25 = vmax.f32 %v1096_v61, 0.0 }
 0x2fc   :  { %v2701_v14 = vpack.c.bf16 %v1112_v25, %v1111_v2 }
 0x2fd   :  { %v1058_v9 = vpop.f32.mrf.mxu1 }
 0x2fe   :  { %1301 = vmatmul.bf16.gmra.mxu3 %v2701_v14  ;;  %v1059_v10 = vadd.f32 %v1058_v9, %v961_v7  ;;  %v976_v7 = vpop.f32.mrf.mxu0 }
 0x300   :  { %v1097_v54 = vadd.f32 %v2692_v48, %v1059_v10 }
 0x302   :  { %v1113_v3 = vmax.f32 %v1097_v54, 0.0 }
 0x305   :  { %v1060_v17 = vpop.f32.mrf.mxu1 }
 0x306   :  { %v1061_v26 = vadd.f32 %v1060_v17, %v963_v36  ;;  %v978_v62 = vpop.f32.mrf.mxu0 }
 0x308   :  { %v1098_v59 = vadd.f32 %v2692_v48, %v1061_v26 }
 0x30a   :  { %v1114_v27 = vmax.f32 %v1098_v59, 0.0 }
 0x30c   :  { %v2706_v29 = vpack.c.bf16 %v1114_v27, %v1113_v3 }
 0x30d   :  { %v1063_v24 = vpop.f32.mrf.mxu1 }
 0x30e   :  { %1306 = vmatmul.bf16.gmra.mxu3 %v2706_v29  ;;  %v1064_v32 = vadd.f32 %v1063_v24, %v966_v15  ;;  %v981_v9 = vpop.f32.mrf.mxu0 }
 0x310   :  { %v1099_v34 = vadd.f32 %v2692_v48, %v1064_v32 }
 0x312   :  { %v1115_v6 = vmax.f32 %v1099_v34, 0.0 }
 0x315   :  { %v1065_v33 = vpop.f32.mrf.mxu1 }
 0x316   :  { %v1066_v41 = vadd.f32 %v1065_v33, %v968_v11  ;;  %v983_v59 = vpop.f32.mrf.mxu0 }
 0x318   :  { %v1100_v35 = vadd.f32 %v2692_v48, %v1066_v41 }
 0x31a   :  { %v1116_v37 = vmax.f32 %v1100_v35, 0.0 }
 0x31c   :  { %v1128_v8 = vpack.c.bf16 %v1116_v37, %v1115_v6 }
 0x31d   :  { %v1068_v42 = vpop.f32.mrf.mxu1 }
 0x31e   :  { %1311 = vmatmul.bf16.gmra.mxu3 %v1128_v8  ;;  %v1069_v13 = vadd.f32 %v1068_v42, %v971_v30  ;;  %v986_v41 = vpop.f32.mrf.mxu0 }
 0x320   :  { %v1101_v51 = vadd.f32 %v2692_v48, %v1069_v13 }
 0x322   :  { %v1117_v36 = vmax.f32 %v1101_v51, 0.0 }
 0x325   :  { %v1070_v46 = vpop.f32.mrf.mxu1 }
 0x326   :  { %v1071_v52 = vadd.f32 %v1070_v46, %v973_v1  ;;  %v988_v37 = vpop.f32.mrf.mxu0 }
 0x328   :  { %v1102_v31 = vadd.f32 %v2692_v48, %v1071_v52 }
 0x32a   :  { %v1118_v50 = vmax.f32 %v1102_v31, 0.0 }
 0x32c   :  { %v1129_v53 = vpack.c.bf16 %v1118_v50, %v1117_v36 }
 0x32d   :  { %v1073_v63 = vpop.f32.mrf.mxu1 }
 0x32e   :  { %1316 = vmatmul.bf16.gmra.mxu3 %v1129_v53  ;;  %v1074_v61 = vadd.f32 %v1073_v63, %v976_v7 }
 0x330   :  { %v1103_v25 = vadd.f32 %v2692_v48, %v1074_v61 }
 0x332   :  { %v1119_v11 = vmax.f32 %v1103_v25, 0.0 }
 0x335   :  { %v1075_v2 = vpop.f32.mrf.mxu1 }
 0x336   :  { %v1076_v15 = vadd.f32 %v1075_v2, %v978_v62 }
 0x338   :  { %v1104_v10 = vadd.f32 %v2692_v48, %v1076_v15 }
 0x33a   :  { %v1120_v17 = vmax.f32 %v1104_v10, 0.0 }
 0x33c   :  { %v1130_v54 = vpack.c.bf16 %v1120_v17, %v1119_v11 }
 0x33d   :  { %v1078_v26 = vpop.f32.mrf.mxu1 }
 0x33e   :  { %1321 = vmatmul.bf16.gmra.mxu3 %v1130_v54  ;;  %v1079_v3 = vadd.f32 %v1078_v26, %v981_v9 }
 0x340   :  { %v1105_v24 = vadd.f32 %v2692_v48, %v1079_v3 }
 0x342   :  { %v1121_v33 = vmax.f32 %v1105_v24, 0.0 }
 0x345   :  { %v1080_v27 = vpop.f32.mrf.mxu1 }
 0x346   :  { %v1081_v30 = vadd.f32 %v1080_v27, %v983_v59 }
 0x348   :  { %v1106_v32 = vadd.f32 %v2692_v48, %v1081_v30 }
 0x34a   :  { %v1122_v34 = vmax.f32 %v1106_v32, 0.0 }
 0x34c   :  { %v1131_v35 = vpack.c.bf16 %v1122_v34, %v1121_v33 }
 0x34d   :  { %v1083_v1 = vpop.f32.mrf.mxu1 }
 0x34e   :  { %1326 = vmatmul.bf16.gmra.mxu3 %v1131_v35  ;;  %v1084_v6 = vadd.f32 %v1083_v1, %v986_v41 }
 0x350   :  { %v1107_v13 = vadd.f32 %v2692_v48, %v1084_v6  ;;  %v2773_v6 = vld [vmem:[%s2843_s4 + $0x2] ss:$0 sm:$0xff] }
 0x352   :  { %v1123_v51 = vmax.f32 %v1107_v13, 0.0 }
 0x355   :  { %v1085_v42 = vpop.f32.mrf.mxu1 }
 0x356   :  { %v1086_v7 = vadd.f32 %v1085_v42, %v988_v37 }
 0x358   :  { %v1108_v46 = vadd.f32 %v2692_v48, %v1086_v7  ;;  %v1812_v48 = vld [vmem:[%s2842_s2 + $0xb8] sm:$0xff] }
 0x359   :  { %1385 = vmatpush.bf16.msra.mxu0 %v1812_v48 }
 0x35a   :  { %v1124_v52 = vmax.f32 %v1108_v46, 0.0 }
 0x35c   :  { %v1132_v31 = vpack.c.bf16 %v1124_v52, %v1123_v51 }
 0x35e   :  { %1133 = vmatpush.bf16.msra.mxu2 %v1132_v31  ;;  %1331 = vmatmul.bf16.gmra.mxu3 %v1132_v31 }
 0x362   :  { %1134 = vmatpush.bf16.msra.mxu2 %v1131_v35 }
 0x366   :  { %1135 = vmatpush.bf16.msra.mxu2 %v1130_v54 }
 0x36a   :  { %1136 = vmatpush.bf16.msra.mxu2 %v1129_v53 }
 0x36e   :  { %1137 = vmatpush.bf16.msra.mxu2 %v1128_v8 }
 0x372   :  { %1138 = vmatpush.bf16.msra.mxu2 %v2706_v29 }
 0x376   :  { %1139 = vmatpush.bf16.msra.mxu2 %v2701_v14 }
 0x37a   :  { %1140 = vmatpush.bf16.msra.mxu2 %v2696_v43  ;;  %v1811_v43 = vld [vmem:[%s2842_s2 + $0xb0] sm:$0xff] }
 0x37b   :  { %1386 = vmatpush.bf16.msra.mxu0 %v1811_v43 }
 0x37d   :  { %1141 = vmatmul.bf16.vlgmr.msra.gmra.mxu2 %v2580_v49  ;;  %v1810_v49 = vld [vmem:[%s2842_s2 + $0xa8] sm:$0xff] }
 0x37f   :  { %1387 = vmatpush.bf16.msra.mxu0 %v1810_v49 }
 0x38d   :  { %1146 = vmatmul.bf16.gmra.mxu2 %v2586_v28  ;;  %v1809_v28 = vld [vmem:[%s2842_s2 + $0xa0] sm:$0xff] }
 0x38e   :  { %1388 = vmatpush.bf16.msra.mxu0 %v1809_v28 }
 0x39d   :  { %1151 = vmatmul.bf16.gmra.mxu2 %v2592_v44  ;;  %v1808_v44 = vld [vmem:[%s2842_s2 + $0x98] sm:$0xff] }
 0x39e   :  { %1389 = vmatpush.bf16.msra.mxu0 %v1808_v44 }
 0x3ad   :  { %1156 = vmatmul.bf16.gmra.mxu2 %v2598_v18  ;;  %v1807_v18 = vld [vmem:[%s2842_s2 + $0x90] sm:$0xff] }
 0x3ae   :  { %1390 = vmatpush.bf16.msra.mxu0 %v1807_v18 }
 0x3bd   :  { %1161 = vmatmul.bf16.gmra.mxu2 %v2604_v23  ;;  %v1806_v23 = vld [vmem:[%s2842_s2 + $0x88] sm:$0xff] }
 0x3be   :  { %1391 = vmatpush.bf16.msra.mxu0 %v1806_v23 }
 0x3cd   :  { %1166 = vmatmul.bf16.gmra.mxu2 %v2613_v39  ;;  %v1805_v39 = vld [vmem:[%s2842_s2 + $0x80] sm:$0xff] }
 0x3ce   :  { %1392 = vmatpush.bf16.msra.mxu0 %v1805_v39 }
 0x3dd   :  { %1171 = vmatmul.bf16.gmra.mxu2 %v2631_v16 }
 0x3ed   :  { %1176 = vmatmul.bf16.gmra.mxu2 %v2646_v12 }
 0x400   :  { %v1142_v14 = vpop.f32.mrf.mxu2 }
 0x401   :  { %v1182_v29 = vmul.f32 %v1142_v14, %v2169_v57 }
 0x408   :  { %v1144_v16 = vpop.f32.mrf.mxu2 }
 0x409   :  { %v1183_v8 = vmul.f32 %v1144_v16, %v2167_v56 }
 0x40b   :  { %v1198_v36 = vpack.c.bf16 %v1183_v8, %v1182_v29 }
 0x40d   :  { %1393 = vmatmul.bf16.vlgmr.msra.gmra.mxu0 %v1198_v36 }
 0x410   :  { %v1147_v50 = vpop.f32.mrf.mxu2 }
 0x411   :  { %v1184_v62 = vmul.f32 %v1147_v50, %v2236_v40 }
 0x418   :  { %v1149_v53 = vpop.f32.mrf.mxu2 }
 0x419   :  { %v1185_v63 = vmul.f32 %v1149_v53, %v2230_v38 }
 0x41b   :  { %v1199_v61 = vpack.c.bf16 %v1185_v63, %v1184_v62 }
 0x41d   :  { %1398 = vmatmul.bf16.gmra.mxu0 %v1199_v61 }
 0x420   :  { %v1152_v2 = vpop.f32.mrf.mxu2 }
 0x421   :  { %v1186_v12 = vmul.f32 %v1152_v2, %v2285_v5 }
 0x428   :  { %v1154_v25 = vpop.f32.mrf.mxu2 }
 0x429   :  { %v1187_v15 = vmul.f32 %v1154_v25, %v2283_v4 }
 0x42b   :  { %v1200_v9 = vpack.c.bf16 %v1187_v15, %v1186_v12 }
 0x42d   :  { %1403 = vmatmul.bf16.gmra.mxu0 %v1200_v9 }
 0x430   :  { %v1157_v57 = vpop.f32.mrf.mxu2 }
 0x431   :  { %v1188_v10 = vmul.f32 %v1157_v57, %v2340_v47 }
 0x438   :  { %v1159_v56 = vpop.f32.mrf.mxu2 }
 0x439   :  { %v1189_v11 = vmul.f32 %v1159_v56, %v2338_v45 }
 0x43b   :  { %v1201_v17 = vpack.c.bf16 %v1189_v11, %v1188_v10 }
 0x43d   :  { %1408 = vmatmul.bf16.gmra.mxu0 %v1201_v17 }
 0x440   :  { %v1162_v40 = vpop.f32.mrf.mxu2 }
 0x441   :  { %v1190_v54 = vmul.f32 %v1162_v40, %v2395_v21  ;;  %v1297_v21 = vpop.f32.mrf.mxu3 }
 0x448   :  { %v1164_v38 = vpop.f32.mrf.mxu2 }
 0x449   :  { %v1191_v26 = vmul.f32 %v1164_v38, %v2393_v20  ;;  %v1299_v34 = vpop.f32.mrf.mxu3 }
 0x44b   :  { %v1202_v59 = vpack.c.bf16 %v1191_v26, %v1190_v54 }
 0x44d   :  { %1413 = vmatmul.bf16.gmra.mxu0 %v1202_v59 }
 0x450   :  { %v1167_v5 = vpop.f32.mrf.mxu2 }
 0x451   :  { %v1192_v3 = vmul.f32 %v1167_v5, %v2450_v58 }
 0x458   :  { %v1169_v4 = vpop.f32.mrf.mxu2 }
 0x459   :  { %v1193_v27 = vmul.f32 %v1169_v4, %v2448_v55  ;;  %v1302_v55 = vpop.f32.mrf.mxu3 }
 0x45b   :  { %v1203_v24 = vpack.c.bf16 %v1193_v27, %v1192_v3 }
 0x45d   :  { %1418 = vmatmul.bf16.gmra.mxu0 %v1203_v24 }
 0x460   :  { %v1172_v47 = vpop.f32.mrf.mxu2 }
 0x461   :  { %v1194_v30 = vmul.f32 %v1172_v47, %v2501_v22  ;;  %v1304_v22 = vpop.f32.mrf.mxu3 }
 0x468   :  { %v1174_v45 = vpop.f32.mrf.mxu2 }
 0x469   :  { %v1195_v32 = vmul.f32 %v1174_v45, %v2499_v19 }
 0x46b   :  { %v1204_v33 = vpack.c.bf16 %v1195_v32, %v1194_v30 }
 0x46d   :  { %1423 = vmatmul.bf16.gmra.mxu0 %v1204_v33 }
 0x470   :  { %v1177_v20 = vpop.f32.mrf.mxu2 }
 0x471   :  { %v1196_v35 = vmul.f32 %v1177_v20, %v2529_v0 }
 0x478   :  { %v1179_v41 = vpop.f32.mrf.mxu2 }
 0x479   :  { %v1197_v58 = vmul.f32 %v1179_v41, %v2531_v60  ;;  %v1307_v60 = vpop.f32.mrf.mxu3 }
 0x47b   :  { %v1205_v1 = vpack.c.bf16 %v1197_v58, %v1196_v35 }
 0x47d   :  { %1428 = vmatmul.bf16.gmra.mxu0 %v1205_v1 }
 0x481   :  { %v1309_v31 = vpop.f32.mrf.mxu3 }
 0x489   :  { %v1312_v28 = vpop.f32.mrf.mxu3 }
 0x48a   :  { %v1394_v19 = vpop.f32.mrf.mxu0 }
 0x48b   :  { %v1395_v37 = vadd.f32 %v1394_v19, %v1297_v21 }
 0x48d   :  { %v1439_v42 = vadd.f32 %v2773_v6, %v1395_v37 }
 0x48f   :  { %1455 = vst [vmem:[%s2844_s5] sm:$0xff] %v1439_v42 }
 0x491   :  { %v1314_v39 = vpop.f32.mrf.mxu3 }
 0x492   :  { %v1396_v0 = vpop.f32.mrf.mxu0 }
 0x493   :  { %v1397_v13 = vadd.f32 %v1396_v0, %v1299_v34 }
 0x495   :  { %v1440_v7 = vadd.f32 %v2773_v6, %v1397_v13 }
 0x497   :  { %1456 = vst [vmem:[%s2844_s5 + $0x8] sm:$0xff] %v1440_v7 }
 0x499   :  { %v1317_v50 = vpop.f32.mrf.mxu3 }
 0x49a   :  { %v1399_v46 = vpop.f32.mrf.mxu0 }
 0x49b   :  { %v1400_v51 = vadd.f32 %v1399_v46, %v1302_v55 }
 0x49d   :  { %v1441_v52 = vadd.f32 %v2773_v6, %v1400_v51 }
 0x49f   :  { %1457 = vst [vmem:[%s2844_s5 + $0x10] sm:$0xff] %v1441_v52 }
 0x4a1   :  { %v1319_v2 = vpop.f32.mrf.mxu3 }
 0x4a2   :  { %v1401_v48 = vpop.f32.mrf.mxu0 }
 0x4a3   :  { %v1402_v43 = vadd.f32 %v1401_v48, %v1304_v22 }
 0x4a5   :  { %v1442_v49 = vadd.f32 %v2773_v6, %v1402_v43 }
 0x4a7   :  { %1458 = vst [vmem:[%s2844_s5 + $0x18] sm:$0xff] %v1442_v49 }
 0x4a9   :  { %v1322_v9 = vpop.f32.mrf.mxu3 }
 0x4aa   :  { %v1404_v44 = vpop.f32.mrf.mxu0 }
 0x4ab   :  { %v1405_v18 = vadd.f32 %v1404_v44, %v1307_v60 }
 0x4ad   :  { %v1443_v23 = vadd.f32 %v2773_v6, %v1405_v18 }
 0x4af   :  { %1459 = vst [vmem:[%s2844_s5 + $0x20] sm:$0xff] %v1443_v23 }
 0x4b1   :  { %v1324_v11 = vpop.f32.mrf.mxu3 }
 0x4b2   :  { %v1406_v14 = vpop.f32.mrf.mxu0 }
 0x4b3   :  { %v1407_v16 = vadd.f32 %v1406_v14, %v1309_v31 }
 0x4b5   :  { %v1444_v29 = vadd.f32 %v2773_v6, %v1407_v16 }
 0x4b7   :  { %1460 = vst [vmem:[%s2844_s5 + $0x28] sm:$0xff] %v1444_v29 }
 0x4b9   :  { %v1327_v59 = vpop.f32.mrf.mxu3 }
 0x4ba   :  { %v1409_v8 = vpop.f32.mrf.mxu0 }
 0x4bb   :  { %v1410_v36 = vadd.f32 %v1409_v8, %v1312_v28 }
 0x4bd   :  { %v1445_v53 = vadd.f32 %v2773_v6, %v1410_v36 }
 0x4bf   :  { %1461 = vst [vmem:[%s2844_s5 + $0x30] sm:$0xff] %v1445_v53 }
 0x4c1   :  { %v1329_v24 = vpop.f32.mrf.mxu3 }
 0x4c2   :  { %v1411_v62 = vpop.f32.mrf.mxu0 }
 0x4c3   :  { %v1412_v63 = vadd.f32 %v1411_v62, %v1314_v39 }
 0x4c5   :  { %v1446_v61 = vadd.f32 %v2773_v6, %v1412_v63 }
 0x4c7   :  { %1462 = vst [vmem:[%s2844_s5 + $0x38] sm:$0xff] %v1446_v61 }
 0x4c9   :  { %v1332_v32 = vpop.f32.mrf.mxu3 }
 0x4ca   :  { %v1414_v25 = vpop.f32.mrf.mxu0 }
 0x4cb   :  { %v1415_v12 = vadd.f32 %v1414_v25, %v1317_v50 }
 0x4cd   :  { %v1447_v15 = vadd.f32 %v2773_v6, %v1415_v12 }
 0x4cf   :  { %1463 = vst [vmem:[%s2844_s5 + $0x40] sm:$0xff] %v1447_v15 }
 0x4d1   :  { %v1334_v34 = vpop.f32.mrf.mxu3 }
 0x4d2   :  { %v1416_v57 = vpop.f32.mrf.mxu0 }
 0x4d3   :  { %v1417_v56 = vadd.f32 %v1416_v57, %v1319_v2 }
 0x4d5   :  { %v1448_v10 = vadd.f32 %v2773_v6, %v1417_v56 }
 0x4d7   :  { %1464 = vst [vmem:[%s2844_s5 + $0x48] sm:$0xff] %v1448_v10 }
 0x4da   :  { %v1419_v17 = vpop.f32.mrf.mxu0 }
 0x4db   :  { %v1420_v40 = vadd.f32 %v1419_v17, %v1322_v9 }
 0x4dd   :  { %v1449_v38 = vadd.f32 %v2773_v6, %v1420_v40 }
 0x4df   :  { %1465 = vst [vmem:[%s2844_s5 + $0x50] sm:$0xff] %v1449_v38 }
 0x4e2   :  { %v1421_v54 = vpop.f32.mrf.mxu0 }
 0x4e3   :  { %v1422_v26 = vadd.f32 %v1421_v54, %v1324_v11 }
 0x4e5   :  { %v1450_v5 = vadd.f32 %v2773_v6, %v1422_v26 }
 0x4e7   :  { %1466 = vst [vmem:[%s2844_s5 + $0x58] sm:$0xff] %v1450_v5 }
 0x4ea   :  { %v1424_v4 = vpop.f32.mrf.mxu0 }
 0x4eb   :  { %v1425_v3 = vadd.f32 %v1424_v4, %v1327_v59 }
 0x4ed   :  { %v1451_v27 = vadd.f32 %v2773_v6, %v1425_v3 }
 0x4ef   :  { %1467 = vst [vmem:[%s2844_s5 + $0x60] sm:$0xff] %v1451_v27 }
 0x4f2   :  { %v1426_v47 = vpop.f32.mrf.mxu0 }
 0x4f3   :  { %v1427_v45 = vadd.f32 %v1426_v47, %v1329_v24 }
 0x4f5   :  { %v1452_v30 = vadd.f32 %v2773_v6, %v1427_v45 }
 0x4f7   :  { %1468 = vst [vmem:[%s2844_s5 + $0x68] sm:$0xff] %v1452_v30 }
 0x4fa   :  { %v1429_v33 = vpop.f32.mrf.mxu0 }
 0x4fb   :  { %v1430_v21 = vadd.f32 %v1429_v33, %v1332_v32 }
 0x4fd   :  { %v1453_v20 = vadd.f32 %v2773_v6, %v1430_v21 }
 0x4ff   :  { %1469 = vst [vmem:[%s2844_s5 + $0x70] sm:$0xff] %v1453_v20 }
 0x502   :  { %v1431_v41 = vpop.f32.mrf.mxu0 }
 0x503   :  { %v1432_v35 = vadd.f32 %v1431_v41, %v1334_v34 }
 0x505   :  { %v1454_v58 = vadd.f32 %v2773_v6, %v1432_v35 }
 0x507   :  { %1470 = vst [vmem:[%s2844_s5 + $0x78] sm:$0xff] %v1454_v58 }

</bundles_post_ra>
